<compile_context>
chip_gen: v6e
topology: v6e:2x2x1
jax: 0.10.0
libtpu: 0.0.40
codegen_flags: <defaults>
</compile_context>

<pallas_src>
import functools

import jax
import jax.numpy as jnp
import numpy as np
from jax.experimental import pallas as pl
from jax.experimental.pallas import tpu as pltpu


_BB = 8  # batch tile (sublane-aligned); one grid step / megacore shard per tile


# ----------------------------------------------------------------------------
# Fused kernel: pre-projected layer-0 gates -> L LSTM layers -> gated outputs.
# One grid axis over batch tiles ("parallel"); everything else lives in VMEM.
# ----------------------------------------------------------------------------
def _make_fused_kernel(num_layers, T, BB, H):
    G = 4 * H

    def kernel(*refs):
        nw = 1 + 3 * (num_layers - 1)
        len_ref, g0_ref = refs[0], refs[1]
        w_refs = refs[2:2 + nw]
        wg_ref, bg_ref = refs[2 + nw], refs[3 + nw]
        out_ref, hF_ref, cF_ref = refs[4 + nw:7 + nw]
        act_sc, gates_sc = refs[7 + nw:]

        # pack/pad_packed semantics: row b is valid iff t < lengths[b]. The lengths vector
        # is loaded once; the mask is one VPU compare per step (no mask scratch / DMA).
        len_col = len_ref[...]                                     # (BB, 1) int32
        # Hoisted lane mask selecting the tanh gate region (lanes [2H, 3H)); built once —
        # JAX does not CSE broadcast_in_dim, so keep it out of the unrolled time loop.
        lane = jax.lax.broadcasted_iota(jnp.int32, (BB, G), 1)
        is_tanh = (lane >= 2 * H) & (lane < 3 * H)

        widx = 0
        for l in range(num_layers):
            if l == 0:
                whh_ref = w_refs[widx]
                widx += 1

                def read_pre(t):                       # layer-0 gates precomputed outside
                    return g0_ref[t]                   # (BB, G)
            else:
                wih_ref, b_ref, whh_ref = w_refs[widx:widx + 3]
                widx += 3
                # Hoisted input projection: ONE (T*BB, H) @ (H, 4H) MXU matmul per layer
                # instead of T tiny matmuls inside the serial recurrence.
                gates_sc[...] = (
                    jnp.dot(act_sc[...], wih_ref[...],
                            preferred_element_type=jnp.float32) + b_ref[...])

                def read_pre(t):
                    r0 = pl.multiple_of(t * BB, BB)
                    return gates_sc[pl.ds(r0, BB), :]  # (BB, G)

            whh = whh_ref[...]                         # (H, 4H), loaded once per layer

            def step(t, carry, whh=whh, read_pre=read_pre):
                h, c = carry                                           # (BB, H) each
                g = read_pre(t) + jnp.dot(h, whh,
                                          preferred_element_type=jnp.float32)  # (BB, 4H)
                # Two full-width EUP pushes (sigmoid + tanh over all 4H lanes) + one lane
                # select, instead of four quarter-width activations.
                a = jnp.where(is_tanh, jnp.tanh(g), jax.nn.sigmoid(g))
                i_g = a[:, 0:H]
                f_g = a[:, H:2 * H]
                g_g = a[:, 2 * H:3 * H]
                o_g = a[:, 3 * H:4 * H]
                c_new = f_g * c + i_g * g_g
                h_new = o_g * jnp.tanh(c_new)
                m = t < len_col                                        # (BB, 1) bool
                r0 = pl.multiple_of(t * BB, BB)
                # pack/unpack semantics: outputs zero past each length; h/c freeze.
                act_sc[pl.ds(r0, BB), :] = jnp.where(m, h_new, 0.0)
                return (jnp.where(m, h_new, h), jnp.where(m, c_new, c))

            h0 = jnp.zeros((BB, H), jnp.float32)
            c0 = jnp.zeros((BB, H), jnp.float32)
            h_f, c_f = jax.lax.fori_loop(0, T, step, (h0, c0), unroll=min(T, 8))
            hF_ref[l] = h_f
            cF_ref[l] = c_f

        # Output gate fused into the final store: p = sigmoid(<y, w_g> + b_g) as a VPU
        # multiply + lane reduction over the whole VMEM-resident slab.
        y = act_sc[...]                                                # (T*BB, H)
        p = jax.nn.sigmoid(
            jnp.sum(y * wg_ref[...], axis=-1, keepdims=True) + bg_ref[...])
        out_ref[...] = (y * p).reshape(T, BB, H)

    return kernel


# ----------------------------------------------------------------------------
# Full forward (plain-JAX glue: embedding fold+gather, padding, param reshape)
# ----------------------------------------------------------------------------
def gated_rnn_encoder_forward(input_ids, lengths, params, num_layers):
    T, B = input_ids.shape
    H = params["w_hh_0"].shape[1]
    G = 4 * H
    BB = _BB
    Bp = ((B + BB - 1) // BB) * BB
    nb = Bp // BB

    # Fold the layer-0 input projection (and both layer-0 biases) into the embedding
    # table: one tiny (vocab, E) @ (E, 4H) matmul replaces the in-kernel (T*Bp, E) @
    # (E, 4H) pass, the x buffer and its HBM->VMEM DMA (vocab is small here).
    emb = params["embedding"].astype(jnp.float32)
    b0 = (params["b_ih_0"] + params["b_hh_0"]).astype(jnp.float32)
    emb_proj = emb @ params["w_ih_0"].astype(jnp.float32).T + b0[None, :]   # (V, 4H)
    g0 = emb_proj[input_ids]                                                # (T, B, 4H)
    g0_p = jnp.zeros((T, Bp, G), jnp.float32).at[:, :B].set(g0)

    # Pad batch to a multiple of 8 sublanes; padded rows get length 0 (always masked).
    len_p = jnp.zeros((Bp, 1), jnp.int32).at[:B, 0].set(lengths.astype(jnp.int32))

    weight_args = [params["w_hh_0"].T.astype(jnp.float32)]                  # (H, 4H)
    for l in range(1, num_layers):
        weight_args += [
            params[f"w_ih_{l}"].T.astype(jnp.float32),                      # (H, 4H)
            (params[f"b_ih_{l}"] + params[f"b_hh_{l}"])[None, :].astype(jnp.float32),
            params[f"w_hh_{l}"].T.astype(jnp.float32),                      # (H, 4H)
        ]
    wg = params["w_g"].astype(jnp.float32)                                  # (1, H)
    bg = params["b_g"].reshape(1, 1).astype(jnp.float32)                    # (1, 1)

    def _full_spec(x):
        nd = x.ndim
        return pl.BlockSpec(x.shape, lambda b: (0,) * nd)

    in_specs = (
        [pl.BlockSpec((BB, 1), lambda b: (b, 0)),
         pl.BlockSpec((T, BB, G), lambda b: (0, b, 0))]
        + [_full_spec(w) for w in weight_args]
        + [_full_spec(wg), _full_spec(bg)]
    )
    out_specs = (
        pl.BlockSpec((T, BB, H), lambda b: (0, b, 0)),
        pl.BlockSpec((num_layers, BB, H), lambda b: (0, b, 0)),
        pl.BlockSpec((num_layers, BB, H), lambda b: (0, b, 0)),
    )
    out_shapes = (
        jax.ShapeDtypeStruct((T, Bp, H), jnp.float32),              # gated outputs
        jax.ShapeDtypeStruct((num_layers, Bp, H), jnp.float32),     # h_n
        jax.ShapeDtypeStruct((num_layers, Bp, H), jnp.float32),     # c_n
    )
    scratch_shapes = [
        pltpu.VMEM((T * BB, H), jnp.float32),     # layer activations (resident)
        pltpu.VMEM((T * BB, G), jnp.float32),     # hoisted input-projection gates
    ]

    # Explicit scoped-VMEM budget (v5e default is only 16 MiB); rough per-tile footprint
    # x4 for input/output double-buffering, floored/capped to stay safe on every gen.
    blk_bytes = 4 * (
        BB + T * BB * G
        + sum(int(np.prod(w.shape)) for w in weight_args) + H + 1
        + T * BB * H + 2 * num_layers * BB * H
        + T * BB * H + T * BB * G
    )
    vmem_limit = int(min(max(4 * blk_bytes + (2 << 20), 16 << 20), 48 << 20))

    kernel = _make_fused_kernel(num_layers, T, BB, H)
    out3d, h_n_p, c_n_p = pl.pallas_call(
        kernel,
        grid=(nb,),
        out_shape=out_shapes,
        in_specs=in_specs,
        out_specs=out_specs,
        scratch_shapes=scratch_shapes,
        compiler_params=pltpu.CompilerParams(
            dimension_semantics=("parallel",),
            vmem_limit_bytes=vmem_limit),
    )(len_p, g0_p, *weight_args, wg, bg)

    outputs = out3d[:, :B]
    h_n = h_n_p[:, :B]
    c_n = c_n_p[:, :B]
    return outputs, (h_n, c_n)


# ----------------------------------------------------------------------------
# Pure-JAX reference (sanity check of the fused Pallas kernel)
# ----------------------------------------------------------------------------
def reference_forward(input_ids, lengths, params, num_layers, H):
    embs = params["embedding"][input_ids]
    T, B, _ = embs.shape
    mask = (jnp.arange(T)[:, None] < lengths[None, :]).astype(jnp.float32)  # (T,B)

    x = embs
    hs, cs = [], []
    for layer in range(num_layers):
        wih = params[f"w_ih_{layer}"]
        whh = params[f"w_hh_{layer}"]
        b = params[f"b_ih_{layer}"] + params[f"b_hh_{layer}"]

        def step(carry, inp, wih=wih, whh=whh, b=b):
            h, c = carry
            x_t, m_t = inp
            gates = x_t @ wih.T + h @ whh.T + b
            i = jax.nn.sigmoid(gates[:, 0:H])
            f = jax.nn.sigmoid(gates[:, H:2 * H])
            g = jnp.tanh(gates[:, 2 * H:3 * H])
            o = jax.nn.sigmoid(gates[:, 3 * H:4 * H])
            c_new = f * c + i * g
            h_new = o * jnp.tanh(c_new)
            m = m_t[:, None]
            return (m * h_new + (1 - m) * h, m * c_new + (1 - m) * c), m * h_new

        (h_f, c_f), y = jax.lax.scan(
            step, (jnp.zeros((B, H), jnp.float32), jnp.zeros((B, H), jnp.float32)),
            (x, mask))
        x = y
        hs.append(h_f)
        cs.append(c_f)

    p = jax.nn.sigmoid(x @ params["w_g"].T + params["b_g"])
    return x * p, (jnp.stack(hs), jnp.stack(cs))


if __name__ == "__main__":
    # Small config consistent with the module
    vocab_size = 50
    emb_size = 32
    hidden = 32
    num_layers = 2
    T, B = 8, 4

    key = jax.random.PRNGKey(0)
    keys = jax.random.split(key, 16)

    params = {
        "embedding": 0.1 * jax.random.normal(keys[0], (vocab_size, emb_size), jnp.float32),
        "w_g": 0.1 * jax.random.normal(keys[1], (1, hidden), jnp.float32),   # Linear(H,1).weight
        "b_g": 0.1 * jax.random.normal(keys[2], (1,), jnp.float32),          # Linear(H,1).bias
    }
    for layer in range(num_layers):
        din = emb_size if layer == 0 else hidden
        params[f"w_ih_{layer}"] = 0.1 * jax.random.normal(keys[3 + 4 * layer], (4 * hidden, din), jnp.float32)
        params[f"w_hh_{layer}"] = 0.1 * jax.random.normal(keys[4 + 4 * layer], (4 * hidden, hidden), jnp.float32)
        params[f"b_ih_{layer}"] = 0.1 * jax.random.normal(keys[5 + 4 * layer], (4 * hidden,), jnp.float32)
        params[f"b_hh_{layer}"] = 0.1 * jax.random.normal(keys[6 + 4 * layer], (4 * hidden,), jnp.float32)

    input_ids = jax.random.randint(keys[15], (T, B), 0, vocab_size, dtype=jnp.int32)
    lengths = jnp.array([8, 7, 5, 3], dtype=jnp.int32)   # sorted descending (pack requirement)

    fwd = functools.partial(gated_rnn_encoder_forward, num_layers=num_layers)
    outputs, (h_n, c_n) = jax.block_until_ready(fwd(input_ids, lengths, params))

    # sanity check vs pure-JAX reference
    ref_out, (ref_h, ref_c) = reference_forward(input_ids, lengths, params, num_layers, hidden)
    np.testing.assert_allclose(np.asarray(outputs), np.asarray(ref_out), atol=5e-3, rtol=5e-3)
    np.testing.assert_allclose(np.asarray(h_n), np.asarray(ref_h), atol=5e-3, rtol=5e-3)
    np.testing.assert_allclose(np.asarray(c_n), np.asarray(ref_c), atol=5e-3, rtol=5e-3)

    print("KERNEL_OK")
</pallas_src>

<mosaic_0001>
module attributes {stable_mosaic.version = 11 : i64} {
  func.func @kernel(%arg0: i32, %arg1: memref<8x1xi32, #tpu.memory_space<vmem>>, %arg2: memref<8x8x128xf32, #tpu.memory_space<vmem>>, %arg3: memref<32x128xf32, #tpu.memory_space<vmem>>, %arg4: memref<32x128xf32, #tpu.memory_space<vmem>>, %arg5: memref<1x128xf32, #tpu.memory_space<vmem>>, %arg6: memref<32x128xf32, #tpu.memory_space<vmem>>, %arg7: memref<1x32xf32, #tpu.memory_space<vmem>>, %arg8: memref<1x1xf32, #tpu.memory_space<vmem>>, %arg9: memref<8x8x32xf32, #tpu.memory_space<vmem>>, %arg10: memref<2x8x32xf32, #tpu.memory_space<vmem>>, %arg11: memref<2x8x32xf32, #tpu.memory_space<vmem>>, %arg12: memref<64x32xf32, #tpu.memory_space<vmem>>, %arg13: memref<64x128xf32, #tpu.memory_space<vmem>>) attributes {dimension_semantics = [#tpu.dimension_semantics<parallel>], iteration_bounds = array<i64: 1>, scalar_prefetch = 0 : i64, scratch_operands = 2 : i64, tpu.core_type = #tpu.core_type<tc>, window_params = [{transform_indices = @transform_0, window_bounds = array<i64: 8, 1>}, {transform_indices = @transform_1, window_bounds = array<i64: 8, 8, 128>}, {pipeline_mode = #tpu.pipeline_mode<synchronous>, transform_indices = @transform_2, window_bounds = array<i64: 32, 128>}, {pipeline_mode = #tpu.pipeline_mode<synchronous>, transform_indices = @transform_3, window_bounds = array<i64: 32, 128>}, {pipeline_mode = #tpu.pipeline_mode<synchronous>, transform_indices = @transform_4, window_bounds = array<i64: 1, 128>}, {pipeline_mode = #tpu.pipeline_mode<synchronous>, transform_indices = @transform_5, window_bounds = array<i64: 32, 128>}, {pipeline_mode = #tpu.pipeline_mode<synchronous>, transform_indices = @transform_6, window_bounds = array<i64: 1, 32>}, {pipeline_mode = #tpu.pipeline_mode<synchronous>, transform_indices = @transform_7, window_bounds = array<i64: 1, 1>}, {transform_indices = @transform_8, window_bounds = array<i64: 8, 8, 32>}, {transform_indices = @transform_9, window_bounds = array<i64: 2, 8, 32>}, {transform_indices = @transform_10, window_bounds = array<i64: 2, 8, 32>}]} {
    %c0 = arith.constant 0 : index
    %c0_0 = arith.constant 0 : index
    %0 = vector.load %arg1[%c0, %c0_0] : memref<8x1xi32, #tpu.memory_space<vmem>>, vector<8x1xi32>
    %1 = tpu.iota {dimensions = array<i32: 1>} : vector<8x128xi32>
    %c64_i32 = arith.constant 64 : i32
    %2 = vector.broadcast %c64_i32 : i32 to vector<8x128xi32>
    %3 = arith.cmpi sge, %1, %2 : vector<8x128xi32>
    %c96_i32 = arith.constant 96 : i32
    %4 = vector.broadcast %c96_i32 : i32 to vector<8x128xi32>
    %5 = arith.cmpi slt, %1, %4 : vector<8x128xi32>
    %6 = arith.andi %3, %5 : vector<8x128xi1>
    %c0_1 = arith.constant 0 : index
    %c0_2 = arith.constant 0 : index
    %7 = vector.load %arg3[%c0_1, %c0_2] : memref<32x128xf32, #tpu.memory_space<vmem>>, vector<32x128xf32>
    %cst = arith.constant 0.000000e+00 : f32
    %8 = vector.broadcast %cst : f32 to vector<8x32xf32>
    %cst_3 = arith.constant 0.000000e+00 : f32
    %9 = vector.broadcast %cst_3 : f32 to vector<8x32xf32>
    %c0_i32 = arith.constant 0 : i32
    %10 = arith.index_cast %c0_i32 : i32 to index
    %c0_4 = arith.constant 0 : index
    %c0_5 = arith.constant 0 : index
    %11 = vector.load %arg2[%10, %c0_4, %c0_5] : memref<8x8x128xf32, #tpu.memory_space<vmem>>, vector<1x8x128xf32>
    %12 = vector.shape_cast %11 : vector<1x8x128xf32> to vector<8x128xf32>
    %cst_6 = arith.constant dense<0.000000e+00> : vector<8x128xf32>
    %13 = tpu.matmul %8, %7, %cst_6 {dimension_numbers = #tpu.dot_dimension_numbers<[1], [0], [0], [1], [0, 0, 1, 1], [], []>} : vector<8x32xf32>, vector<32x128xf32>, vector<8x128xf32> -> vector<8x128xf32>
    %14 = arith.addf %12, %13 : vector<8x128xf32>
    %15 = math.tanh %14 : vector<8x128xf32>
    %16 = arith.negf %14 : vector<8x128xf32>
    %17 = math.exp %16 : vector<8x128xf32>
    %cst_7 = arith.constant 1.000000e+00 : f32
    %18 = vector.broadcast %cst_7 : f32 to vector<8x128xf32>
    %19 = arith.addf %18, %17 : vector<8x128xf32>
    %20 = arith.divf %18, %19 : vector<8x128xf32>
    %21 = arith.select %6, %15, %20 : vector<8x128xi1>, vector<8x128xf32>
    %22 = vector.extract_strided_slice %21 {offsets = [0, 0], sizes = [8, 32], strides = [1, 1]} : vector<8x128xf32> to vector<8x32xf32>
    %23 = vector.extract_strided_slice %21 {offsets = [0, 32], sizes = [8, 32], strides = [1, 1]} : vector<8x128xf32> to vector<8x32xf32>
    %24 = vector.extract_strided_slice %21 {offsets = [0, 64], sizes = [8, 32], strides = [1, 1]} : vector<8x128xf32> to vector<8x32xf32>
    %25 = vector.extract_strided_slice %21 {offsets = [0, 96], sizes = [8, 32], strides = [1, 1]} : vector<8x128xf32> to vector<8x32xf32>
    %26 = arith.mulf %23, %9 : vector<8x32xf32>
    %27 = arith.mulf %22, %24 : vector<8x32xf32>
    %28 = arith.addf %26, %27 : vector<8x32xf32>
    %29 = math.tanh %28 : vector<8x32xf32>
    %30 = arith.mulf %25, %29 : vector<8x32xf32>
    %31 = vector.broadcast %c0_i32 : i32 to vector<8x1xi32>
    %32 = arith.cmpi slt, %31, %0 : vector<8x1xi32>
    %c8_i32 = arith.constant 8 : i32
    %33 = arith.muli %c0_i32, %c8_i32 : i32
    %34 = tpu.assume_multiple %33, 8 : i32
    %cst_8 = arith.constant 0.000000e+00 : f32
    %35 = vector.shape_cast %32 : vector<8x1xi1> to vector<8x1xi1>
    %36 = vector.broadcast %35 : vector<8x1xi1> to vector<8x32xi1>
    %37 = vector.broadcast %cst_8 : f32 to vector<8x32xf32>
    %38 = arith.select %36, %30, %37 : vector<8x32xi1>, vector<8x32xf32>
    %39 = arith.index_cast %34 : i32 to index
    %c0_9 = arith.constant 0 : index
    %40 = vector.load %arg12[%39, %c0_9] : memref<64x32xf32, #tpu.memory_space<vmem>>, vector<8x32xf32>
    tpu.vector_store %arg12[%39, %c0_9], %38 {strides = array<i32>} : memref<64x32xf32, #tpu.memory_space<vmem>>, vector<8x32xf32>,
    %41 = vector.shape_cast %32 : vector<8x1xi1> to vector<8x1xi1>
    %42 = vector.broadcast %41 : vector<8x1xi1> to vector<8x32xi1>
    %43 = arith.select %42, %30, %8 : vector<8x32xi1>, vector<8x32xf32>
    %44 = vector.shape_cast %32 : vector<8x1xi1> to vector<8x1xi1>
    %45 = vector.broadcast %44 : vector<8x1xi1> to vector<8x32xi1>
    %46 = arith.select %45, %28, %9 : vector<8x32xi1>, vector<8x32xf32>
    %c1_i32 = arith.constant 1 : i32
    %47 = arith.index_cast %c1_i32 : i32 to index
    %c0_10 = arith.constant 0 : index
    %c0_11 = arith.constant 0 : index
    %48 = vector.load %arg2[%47, %c0_10, %c0_11] : memref<8x8x128xf32, #tpu.memory_space<vmem>>, vector<1x8x128xf32>
    %49 = vector.shape_cast %48 : vector<1x8x128xf32> to vector<8x128xf32>
    %cst_12 = arith.constant dense<0.000000e+00> : vector<8x128xf32>
    %50 = tpu.matmul %43, %7, %cst_12 {dimension_numbers = #tpu.dot_dimension_numbers<[1], [0], [0], [1], [0, 0, 1, 1], [], []>} : vector<8x32xf32>, vector<32x128xf32>, vector<8x128xf32> -> vector<8x128xf32>
    %51 = arith.addf %49, %50 : vector<8x128xf32>
    %52 = math.tanh %51 : vector<8x128xf32>
    %53 = arith.negf %51 : vector<8x128xf32>
    %54 = math.exp %53 : vector<8x128xf32>
    %cst_13 = arith.constant 1.000000e+00 : f32
    %55 = vector.broadcast %cst_13 : f32 to vector<8x128xf32>
    %56 = arith.addf %55, %54 : vector<8x128xf32>
    %57 = arith.divf %55, %56 : vector<8x128xf32>
    %58 = arith.select %6, %52, %57 : vector<8x128xi1>, vector<8x128xf32>
    %59 = vector.extract_strided_slice %58 {offsets = [0, 0], sizes = [8, 32], strides = [1, 1]} : vector<8x128xf32> to vector<8x32xf32>
    %60 = vector.extract_strided_slice %58 {offsets = [0, 32], sizes = [8, 32], strides = [1, 1]} : vector<8x128xf32> to vector<8x32xf32>
    %61 = vector.extract_strided_slice %58 {offsets = [0, 64], sizes = [8, 32], strides = [1, 1]} : vector<8x128xf32> to vector<8x32xf32>
    %62 = vector.extract_strided_slice %58 {offsets = [0, 96], sizes = [8, 32], strides = [1, 1]} : vector<8x128xf32> to vector<8x32xf32>
    %63 = arith.mulf %60, %46 : vector<8x32xf32>
    %64 = arith.mulf %59, %61 : vector<8x32xf32>
    %65 = arith.addf %63, %64 : vector<8x32xf32>
    %66 = math.tanh %65 : vector<8x32xf32>
    %67 = arith.mulf %62, %66 : vector<8x32xf32>
    %68 = vector.broadcast %c1_i32 : i32 to vector<8x1xi32>
    %69 = arith.cmpi slt, %68, %0 : vector<8x1xi32>
    %c8_i32_14 = arith.constant 8 : i32
    %70 = arith.muli %c1_i32, %c8_i32_14 : i32
    %71 = tpu.assume_multiple %70, 8 : i32
    %cst_15 = arith.constant 0.000000e+00 : f32
    %72 = vector.shape_cast %69 : vector<8x1xi1> to vector<8x1xi1>
    %73 = vector.broadcast %72 : vector<8x1xi1> to vector<8x32xi1>
    %74 = vector.broadcast %cst_15 : f32 to vector<8x32xf32>
    %75 = arith.select %73, %67, %74 : vector<8x32xi1>, vector<8x32xf32>
    %76 = arith.index_cast %71 : i32 to index
    %c0_16 = arith.constant 0 : index
    %77 = vector.load %arg12[%76, %c0_16] : memref<64x32xf32, #tpu.memory_space<vmem>>, vector<8x32xf32>
    tpu.vector_store %arg12[%76, %c0_16], %75 {strides = array<i32>} : memref<64x32xf32, #tpu.memory_space<vmem>>, vector<8x32xf32>,
    %78 = vector.shape_cast %69 : vector<8x1xi1> to vector<8x1xi1>
    %79 = vector.broadcast %78 : vector<8x1xi1> to vector<8x32xi1>
    %80 = arith.select %79, %67, %43 : vector<8x32xi1>, vector<8x32xf32>
    %81 = vector.shape_cast %69 : vector<8x1xi1> to vector<8x1xi1>
    %82 = vector.broadcast %81 : vector<8x1xi1> to vector<8x32xi1>
    %83 = arith.select %82, %65, %46 : vector<8x32xi1>, vector<8x32xf32>
    %c2_i32 = arith.constant 2 : i32
    %84 = arith.index_cast %c2_i32 : i32 to index
    %c0_17 = arith.constant 0 : index
    %c0_18 = arith.constant 0 : index
    %85 = vector.load %arg2[%84, %c0_17, %c0_18] : memref<8x8x128xf32, #tpu.memory_space<vmem>>, vector<1x8x128xf32>
    %86 = vector.shape_cast %85 : vector<1x8x128xf32> to vector<8x128xf32>
    %cst_19 = arith.constant dense<0.000000e+00> : vector<8x128xf32>
    %87 = tpu.matmul %80, %7, %cst_19 {dimension_numbers = #tpu.dot_dimension_numbers<[1], [0], [0], [1], [0, 0, 1, 1], [], []>} : vector<8x32xf32>, vector<32x128xf32>, vector<8x128xf32> -> vector<8x128xf32>
    %88 = arith.addf %86, %87 : vector<8x128xf32>
    %89 = math.tanh %88 : vector<8x128xf32>
    %90 = arith.negf %88 : vector<8x128xf32>
    %91 = math.exp %90 : vector<8x128xf32>
    %cst_20 = arith.constant 1.000000e+00 : f32
    %92 = vector.broadcast %cst_20 : f32 to vector<8x128xf32>
    %93 = arith.addf %92, %91 : vector<8x128xf32>
    %94 = arith.divf %92, %93 : vector<8x128xf32>
    %95 = arith.select %6, %89, %94 : vector<8x128xi1>, vector<8x128xf32>
    %96 = vector.extract_strided_slice %95 {offsets = [0, 0], sizes = [8, 32], strides = [1, 1]} : vector<8x128xf32> to vector<8x32xf32>
    %97 = vector.extract_strided_slice %95 {offsets = [0, 32], sizes = [8, 32], strides = [1, 1]} : vector<8x128xf32> to vector<8x32xf32>
    %98 = vector.extract_strided_slice %95 {offsets = [0, 64], sizes = [8, 32], strides = [1, 1]} : vector<8x128xf32> to vector<8x32xf32>
    %99 = vector.extract_strided_slice %95 {offsets = [0, 96], sizes = [8, 32], strides = [1, 1]} : vector<8x128xf32> to vector<8x32xf32>
    %100 = arith.mulf %97, %83 : vector<8x32xf32>
    %101 = arith.mulf %96, %98 : vector<8x32xf32>
    %102 = arith.addf %100, %101 : vector<8x32xf32>
    %103 = math.tanh %102 : vector<8x32xf32>
    %104 = arith.mulf %99, %103 : vector<8x32xf32>
    %105 = vector.broadcast %c2_i32 : i32 to vector<8x1xi32>
    %106 = arith.cmpi slt, %105, %0 : vector<8x1xi32>
    %c8_i32_21 = arith.constant 8 : i32
    %107 = arith.muli %c2_i32, %c8_i32_21 : i32
    %108 = tpu.assume_multiple %107, 8 : i32
    %cst_22 = arith.constant 0.000000e+00 : f32
    %109 = vector.shape_cast %106 : vector<8x1xi1> to vector<8x1xi1>
    %110 = vector.broadcast %109 : vector<8x1xi1> to vector<8x32xi1>
    %111 = vector.broadcast %cst_22 : f32 to vector<8x32xf32>
    %112 = arith.select %110, %104, %111 : vector<8x32xi1>, vector<8x32xf32>
    %113 = arith.index_cast %108 : i32 to index
    %c0_23 = arith.constant 0 : index
    %114 = vector.load %arg12[%113, %c0_23] : memref<64x32xf32, #tpu.memory_space<vmem>>, vector<8x32xf32>
    tpu.vector_store %arg12[%113, %c0_23], %112 {strides = array<i32>} : memref<64x32xf32, #tpu.memory_space<vmem>>, vector<8x32xf32>,
    %115 = vector.shape_cast %106 : vector<8x1xi1> to vector<8x1xi1>
    %116 = vector.broadcast %115 : vector<8x1xi1> to vector<8x32xi1>
    %117 = arith.select %116, %104, %80 : vector<8x32xi1>, vector<8x32xf32>
    %118 = vector.shape_cast %106 : vector<8x1xi1> to vector<8x1xi1>
    %119 = vector.broadcast %118 : vector<8x1xi1> to vector<8x32xi1>
    %120 = arith.select %119, %102, %83 : vector<8x32xi1>, vector<8x32xf32>
    %c3_i32 = arith.constant 3 : i32
    %121 = arith.index_cast %c3_i32 : i32 to index
    %c0_24 = arith.constant 0 : index
    %c0_25 = arith.constant 0 : index
    %122 = vector.load %arg2[%121, %c0_24, %c0_25] : memref<8x8x128xf32, #tpu.memory_space<vmem>>, vector<1x8x128xf32>
    %123 = vector.shape_cast %122 : vector<1x8x128xf32> to vector<8x128xf32>
    %cst_26 = arith.constant dense<0.000000e+00> : vector<8x128xf32>
    %124 = tpu.matmul %117, %7, %cst_26 {dimension_numbers = #tpu.dot_dimension_numbers<[1], [0], [0], [1], [0, 0, 1, 1], [], []>} : vector<8x32xf32>, vector<32x128xf32>, vector<8x128xf32> -> vector<8x128xf32>
    %125 = arith.addf %123, %124 : vector<8x128xf32>
    %126 = math.tanh %125 : vector<8x128xf32>
    %127 = arith.negf %125 : vector<8x128xf32>
    %128 = math.exp %127 : vector<8x128xf32>
    %cst_27 = arith.constant 1.000000e+00 : f32
    %129 = vector.broadcast %cst_27 : f32 to vector<8x128xf32>
    %130 = arith.addf %129, %128 : vector<8x128xf32>
    %131 = arith.divf %129, %130 : vector<8x128xf32>
    %132 = arith.select %6, %126, %131 : vector<8x128xi1>, vector<8x128xf32>
    %133 = vector.extract_strided_slice %132 {offsets = [0, 0], sizes = [8, 32], strides = [1, 1]} : vector<8x128xf32> to vector<8x32xf32>
    %134 = vector.extract_strided_slice %132 {offsets = [0, 32], sizes = [8, 32], strides = [1, 1]} : vector<8x128xf32> to vector<8x32xf32>
    %135 = vector.extract_strided_slice %132 {offsets = [0, 64], sizes = [8, 32], strides = [1, 1]} : vector<8x128xf32> to vector<8x32xf32>
    %136 = vector.extract_strided_slice %132 {offsets = [0, 96], sizes = [8, 32], strides = [1, 1]} : vector<8x128xf32> to vector<8x32xf32>
    %137 = arith.mulf %134, %120 : vector<8x32xf32>
    %138 = arith.mulf %133, %135 : vector<8x32xf32>
    %139 = arith.addf %137, %138 : vector<8x32xf32>
    %140 = math.tanh %139 : vector<8x32xf32>
    %141 = arith.mulf %136, %140 : vector<8x32xf32>
    %142 = vector.broadcast %c3_i32 : i32 to vector<8x1xi32>
    %143 = arith.cmpi slt, %142, %0 : vector<8x1xi32>
    %c8_i32_28 = arith.constant 8 : i32
    %144 = arith.muli %c3_i32, %c8_i32_28 : i32
    %145 = tpu.assume_multiple %144, 8 : i32
    %cst_29 = arith.constant 0.000000e+00 : f32
    %146 = vector.shape_cast %143 : vector<8x1xi1> to vector<8x1xi1>
    %147 = vector.broadcast %146 : vector<8x1xi1> to vector<8x32xi1>
    %148 = vector.broadcast %cst_29 : f32 to vector<8x32xf32>
    %149 = arith.select %147, %141, %148 : vector<8x32xi1>, vector<8x32xf32>
    %150 = arith.index_cast %145 : i32 to index
    %c0_30 = arith.constant 0 : index
    %151 = vector.load %arg12[%150, %c0_30] : memref<64x32xf32, #tpu.memory_space<vmem>>, vector<8x32xf32>
    tpu.vector_store %arg12[%150, %c0_30], %149 {strides = array<i32>} : memref<64x32xf32, #tpu.memory_space<vmem>>, vector<8x32xf32>,
    %152 = vector.shape_cast %143 : vector<8x1xi1> to vector<8x1xi1>
    %153 = vector.broadcast %152 : vector<8x1xi1> to vector<8x32xi1>
    %154 = arith.select %153, %141, %117 : vector<8x32xi1>, vector<8x32xf32>
    %155 = vector.shape_cast %143 : vector<8x1xi1> to vector<8x1xi1>
    %156 = vector.broadcast %155 : vector<8x1xi1> to vector<8x32xi1>
    %157 = arith.select %156, %139, %120 : vector<8x32xi1>, vector<8x32xf32>
    %c4_i32 = arith.constant 4 : i32
    %158 = arith.index_cast %c4_i32 : i32 to index
    %c0_31 = arith.constant 0 : index
    %c0_32 = arith.constant 0 : index
    %159 = vector.load %arg2[%158, %c0_31, %c0_32] : memref<8x8x128xf32, #tpu.memory_space<vmem>>, vector<1x8x128xf32>
    %160 = vector.shape_cast %159 : vector<1x8x128xf32> to vector<8x128xf32>
    %cst_33 = arith.constant dense<0.000000e+00> : vector<8x128xf32>
    %161 = tpu.matmul %154, %7, %cst_33 {dimension_numbers = #tpu.dot_dimension_numbers<[1], [0], [0], [1], [0, 0, 1, 1], [], []>} : vector<8x32xf32>, vector<32x128xf32>, vector<8x128xf32> -> vector<8x128xf32>
    %162 = arith.addf %160, %161 : vector<8x128xf32>
    %163 = math.tanh %162 : vector<8x128xf32>
    %164 = arith.negf %162 : vector<8x128xf32>
    %165 = math.exp %164 : vector<8x128xf32>
    %cst_34 = arith.constant 1.000000e+00 : f32
    %166 = vector.broadcast %cst_34 : f32 to vector<8x128xf32>
    %167 = arith.addf %166, %165 : vector<8x128xf32>
    %168 = arith.divf %166, %167 : vector<8x128xf32>
    %169 = arith.select %6, %163, %168 : vector<8x128xi1>, vector<8x128xf32>
    %170 = vector.extract_strided_slice %169 {offsets = [0, 0], sizes = [8, 32], strides = [1, 1]} : vector<8x128xf32> to vector<8x32xf32>
    %171 = vector.extract_strided_slice %169 {offsets = [0, 32], sizes = [8, 32], strides = [1, 1]} : vector<8x128xf32> to vector<8x32xf32>
    %172 = vector.extract_strided_slice %169 {offsets = [0, 64], sizes = [8, 32], strides = [1, 1]} : vector<8x128xf32> to vector<8x32xf32>
    %173 = vector.extract_strided_slice %169 {offsets = [0, 96], sizes = [8, 32], strides = [1, 1]} : vector<8x128xf32> to vector<8x32xf32>
    %174 = arith.mulf %171, %157 : vector<8x32xf32>
    %175 = arith.mulf %170, %172 : vector<8x32xf32>
    %176 = arith.addf %174, %175 : vector<8x32xf32>
    %177 = math.tanh %176 : vector<8x32xf32>
    %178 = arith.mulf %173, %177 : vector<8x32xf32>
    %179 = vector.broadcast %c4_i32 : i32 to vector<8x1xi32>
    %180 = arith.cmpi slt, %179, %0 : vector<8x1xi32>
    %c8_i32_35 = arith.constant 8 : i32
    %181 = arith.muli %c4_i32, %c8_i32_35 : i32
    %182 = tpu.assume_multiple %181, 8 : i32
    %cst_36 = arith.constant 0.000000e+00 : f32
    %183 = vector.shape_cast %180 : vector<8x1xi1> to vector<8x1xi1>
    %184 = vector.broadcast %183 : vector<8x1xi1> to vector<8x32xi1>
    %185 = vector.broadcast %cst_36 : f32 to vector<8x32xf32>
    %186 = arith.select %184, %178, %185 : vector<8x32xi1>, vector<8x32xf32>
    %187 = arith.index_cast %182 : i32 to index
    %c0_37 = arith.constant 0 : index
    %188 = vector.load %arg12[%187, %c0_37] : memref<64x32xf32, #tpu.memory_space<vmem>>, vector<8x32xf32>
    tpu.vector_store %arg12[%187, %c0_37], %186 {strides = array<i32>} : memref<64x32xf32, #tpu.memory_space<vmem>>, vector<8x32xf32>,
    %189 = vector.shape_cast %180 : vector<8x1xi1> to vector<8x1xi1>
    %190 = vector.broadcast %189 : vector<8x1xi1> to vector<8x32xi1>
    %191 = arith.select %190, %178, %154 : vector<8x32xi1>, vector<8x32xf32>
    %192 = vector.shape_cast %180 : vector<8x1xi1> to vector<8x1xi1>
    %193 = vector.broadcast %192 : vector<8x1xi1> to vector<8x32xi1>
    %194 = arith.select %193, %176, %157 : vector<8x32xi1>, vector<8x32xf32>
    %c5_i32 = arith.constant 5 : i32
    %195 = arith.index_cast %c5_i32 : i32 to index
    %c0_38 = arith.constant 0 : index
    %c0_39 = arith.constant 0 : index
    %196 = vector.load %arg2[%195, %c0_38, %c0_39] : memref<8x8x128xf32, #tpu.memory_space<vmem>>, vector<1x8x128xf32>
    %197 = vector.shape_cast %196 : vector<1x8x128xf32> to vector<8x128xf32>
    %cst_40 = arith.constant dense<0.000000e+00> : vector<8x128xf32>
    %198 = tpu.matmul %191, %7, %cst_40 {dimension_numbers = #tpu.dot_dimension_numbers<[1], [0], [0], [1], [0, 0, 1, 1], [], []>} : vector<8x32xf32>, vector<32x128xf32>, vector<8x128xf32> -> vector<8x128xf32>
    %199 = arith.addf %197, %198 : vector<8x128xf32>
    %200 = math.tanh %199 : vector<8x128xf32>
    %201 = arith.negf %199 : vector<8x128xf32>
    %202 = math.exp %201 : vector<8x128xf32>
    %cst_41 = arith.constant 1.000000e+00 : f32
    %203 = vector.broadcast %cst_41 : f32 to vector<8x128xf32>
    %204 = arith.addf %203, %202 : vector<8x128xf32>
    %205 = arith.divf %203, %204 : vector<8x128xf32>
    %206 = arith.select %6, %200, %205 : vector<8x128xi1>, vector<8x128xf32>
    %207 = vector.extract_strided_slice %206 {offsets = [0, 0], sizes = [8, 32], strides = [1, 1]} : vector<8x128xf32> to vector<8x32xf32>
    %208 = vector.extract_strided_slice %206 {offsets = [0, 32], sizes = [8, 32], strides = [1, 1]} : vector<8x128xf32> to vector<8x32xf32>
    %209 = vector.extract_strided_slice %206 {offsets = [0, 64], sizes = [8, 32], strides = [1, 1]} : vector<8x128xf32> to vector<8x32xf32>
    %210 = vector.extract_strided_slice %206 {offsets = [0, 96], sizes = [8, 32], strides = [1, 1]} : vector<8x128xf32> to vector<8x32xf32>
    %211 = arith.mulf %208, %194 : vector<8x32xf32>
    %212 = arith.mulf %207, %209 : vector<8x32xf32>
    %213 = arith.addf %211, %212 : vector<8x32xf32>
    %214 = math.tanh %213 : vector<8x32xf32>
    %215 = arith.mulf %210, %214 : vector<8x32xf32>
    %216 = vector.broadcast %c5_i32 : i32 to vector<8x1xi32>
    %217 = arith.cmpi slt, %216, %0 : vector<8x1xi32>
    %c8_i32_42 = arith.constant 8 : i32
    %218 = arith.muli %c5_i32, %c8_i32_42 : i32
    %219 = tpu.assume_multiple %218, 8 : i32
    %cst_43 = arith.constant 0.000000e+00 : f32
    %220 = vector.shape_cast %217 : vector<8x1xi1> to vector<8x1xi1>
    %221 = vector.broadcast %220 : vector<8x1xi1> to vector<8x32xi1>
    %222 = vector.broadcast %cst_43 : f32 to vector<8x32xf32>
    %223 = arith.select %221, %215, %222 : vector<8x32xi1>, vector<8x32xf32>
    %224 = arith.index_cast %219 : i32 to index
    %c0_44 = arith.constant 0 : index
    %225 = vector.load %arg12[%224, %c0_44] : memref<64x32xf32, #tpu.memory_space<vmem>>, vector<8x32xf32>
    tpu.vector_store %arg12[%224, %c0_44], %223 {strides = array<i32>} : memref<64x32xf32, #tpu.memory_space<vmem>>, vector<8x32xf32>,
    %226 = vector.shape_cast %217 : vector<8x1xi1> to vector<8x1xi1>
    %227 = vector.broadcast %226 : vector<8x1xi1> to vector<8x32xi1>
    %228 = arith.select %227, %215, %191 : vector<8x32xi1>, vector<8x32xf32>
    %229 = vector.shape_cast %217 : vector<8x1xi1> to vector<8x1xi1>
    %230 = vector.broadcast %229 : vector<8x1xi1> to vector<8x32xi1>
    %231 = arith.select %230, %213, %194 : vector<8x32xi1>, vector<8x32xf32>
    %c6_i32 = arith.constant 6 : i32
    %232 = arith.index_cast %c6_i32 : i32 to index
    %c0_45 = arith.constant 0 : index
    %c0_46 = arith.constant 0 : index
    %233 = vector.load %arg2[%232, %c0_45, %c0_46] : memref<8x8x128xf32, #tpu.memory_space<vmem>>, vector<1x8x128xf32>
    %234 = vector.shape_cast %233 : vector<1x8x128xf32> to vector<8x128xf32>
    %cst_47 = arith.constant dense<0.000000e+00> : vector<8x128xf32>
    %235 = tpu.matmul %228, %7, %cst_47 {dimension_numbers = #tpu.dot_dimension_numbers<[1], [0], [0], [1], [0, 0, 1, 1], [], []>} : vector<8x32xf32>, vector<32x128xf32>, vector<8x128xf32> -> vector<8x128xf32>
    %236 = arith.addf %234, %235 : vector<8x128xf32>
    %237 = math.tanh %236 : vector<8x128xf32>
    %238 = arith.negf %236 : vector<8x128xf32>
    %239 = math.exp %238 : vector<8x128xf32>
    %cst_48 = arith.constant 1.000000e+00 : f32
    %240 = vector.broadcast %cst_48 : f32 to vector<8x128xf32>
    %241 = arith.addf %240, %239 : vector<8x128xf32>
    %242 = arith.divf %240, %241 : vector<8x128xf32>
    %243 = arith.select %6, %237, %242 : vector<8x128xi1>, vector<8x128xf32>
    %244 = vector.extract_strided_slice %243 {offsets = [0, 0], sizes = [8, 32], strides = [1, 1]} : vector<8x128xf32> to vector<8x32xf32>
    %245 = vector.extract_strided_slice %243 {offsets = [0, 32], sizes = [8, 32], strides = [1, 1]} : vector<8x128xf32> to vector<8x32xf32>
    %246 = vector.extract_strided_slice %243 {offsets = [0, 64], sizes = [8, 32], strides = [1, 1]} : vector<8x128xf32> to vector<8x32xf32>
    %247 = vector.extract_strided_slice %243 {offsets = [0, 96], sizes = [8, 32], strides = [1, 1]} : vector<8x128xf32> to vector<8x32xf32>
    %248 = arith.mulf %245, %231 : vector<8x32xf32>
    %249 = arith.mulf %244, %246 : vector<8x32xf32>
    %250 = arith.addf %248, %249 : vector<8x32xf32>
    %251 = math.tanh %250 : vector<8x32xf32>
    %252 = arith.mulf %247, %251 : vector<8x32xf32>
    %253 = vector.broadcast %c6_i32 : i32 to vector<8x1xi32>
    %254 = arith.cmpi slt, %253, %0 : vector<8x1xi32>
    %c8_i32_49 = arith.constant 8 : i32
    %255 = arith.muli %c6_i32, %c8_i32_49 : i32
    %256 = tpu.assume_multiple %255, 8 : i32
    %cst_50 = arith.constant 0.000000e+00 : f32
    %257 = vector.shape_cast %254 : vector<8x1xi1> to vector<8x1xi1>
    %258 = vector.broadcast %257 : vector<8x1xi1> to vector<8x32xi1>
    %259 = vector.broadcast %cst_50 : f32 to vector<8x32xf32>
    %260 = arith.select %258, %252, %259 : vector<8x32xi1>, vector<8x32xf32>
    %261 = arith.index_cast %256 : i32 to index
    %c0_51 = arith.constant 0 : index
    %262 = vector.load %arg12[%261, %c0_51] : memref<64x32xf32, #tpu.memory_space<vmem>>, vector<8x32xf32>
    tpu.vector_store %arg12[%261, %c0_51], %260 {strides = array<i32>} : memref<64x32xf32, #tpu.memory_space<vmem>>, vector<8x32xf32>,
    %263 = vector.shape_cast %254 : vector<8x1xi1> to vector<8x1xi1>
    %264 = vector.broadcast %263 : vector<8x1xi1> to vector<8x32xi1>
    %265 = arith.select %264, %252, %228 : vector<8x32xi1>, vector<8x32xf32>
    %266 = vector.shape_cast %254 : vector<8x1xi1> to vector<8x1xi1>
    %267 = vector.broadcast %266 : vector<8x1xi1> to vector<8x32xi1>
    %268 = arith.select %267, %250, %231 : vector<8x32xi1>, vector<8x32xf32>
    %c7_i32 = arith.constant 7 : i32
    %269 = arith.index_cast %c7_i32 : i32 to index
    %c0_52 = arith.constant 0 : index
    %c0_53 = arith.constant 0 : index
    %270 = vector.load %arg2[%269, %c0_52, %c0_53] : memref<8x8x128xf32, #tpu.memory_space<vmem>>, vector<1x8x128xf32>
    %271 = vector.shape_cast %270 : vector<1x8x128xf32> to vector<8x128xf32>
    %cst_54 = arith.constant dense<0.000000e+00> : vector<8x128xf32>
    %272 = tpu.matmul %265, %7, %cst_54 {dimension_numbers = #tpu.dot_dimension_numbers<[1], [0], [0], [1], [0, 0, 1, 1], [], []>} : vector<8x32xf32>, vector<32x128xf32>, vector<8x128xf32> -> vector<8x128xf32>
    %273 = arith.addf %271, %272 : vector<8x128xf32>
    %274 = math.tanh %273 : vector<8x128xf32>
    %275 = arith.negf %273 : vector<8x128xf32>
    %276 = math.exp %275 : vector<8x128xf32>
    %cst_55 = arith.constant 1.000000e+00 : f32
    %277 = vector.broadcast %cst_55 : f32 to vector<8x128xf32>
    %278 = arith.addf %277, %276 : vector<8x128xf32>
    %279 = arith.divf %277, %278 : vector<8x128xf32>
    %280 = arith.select %6, %274, %279 : vector<8x128xi1>, vector<8x128xf32>
    %281 = vector.extract_strided_slice %280 {offsets = [0, 0], sizes = [8, 32], strides = [1, 1]} : vector<8x128xf32> to vector<8x32xf32>
    %282 = vector.extract_strided_slice %280 {offsets = [0, 32], sizes = [8, 32], strides = [1, 1]} : vector<8x128xf32> to vector<8x32xf32>
    %283 = vector.extract_strided_slice %280 {offsets = [0, 64], sizes = [8, 32], strides = [1, 1]} : vector<8x128xf32> to vector<8x32xf32>
    %284 = vector.extract_strided_slice %280 {offsets = [0, 96], sizes = [8, 32], strides = [1, 1]} : vector<8x128xf32> to vector<8x32xf32>
    %285 = arith.mulf %282, %268 : vector<8x32xf32>
    %286 = arith.mulf %281, %283 : vector<8x32xf32>
    %287 = arith.addf %285, %286 : vector<8x32xf32>
    %288 = math.tanh %287 : vector<8x32xf32>
    %289 = arith.mulf %284, %288 : vector<8x32xf32>
    %290 = vector.broadcast %c7_i32 : i32 to vector<8x1xi32>
    %291 = arith.cmpi slt, %290, %0 : vector<8x1xi32>
    %c8_i32_56 = arith.constant 8 : i32
    %292 = arith.muli %c7_i32, %c8_i32_56 : i32
    %293 = tpu.assume_multiple %292, 8 : i32
    %cst_57 = arith.constant 0.000000e+00 : f32
    %294 = vector.shape_cast %291 : vector<8x1xi1> to vector<8x1xi1>
    %295 = vector.broadcast %294 : vector<8x1xi1> to vector<8x32xi1>
    %296 = vector.broadcast %cst_57 : f32 to vector<8x32xf32>
    %297 = arith.select %295, %289, %296 : vector<8x32xi1>, vector<8x32xf32>
    %298 = arith.index_cast %293 : i32 to index
    %c0_58 = arith.constant 0 : index
    %299 = vector.load %arg12[%298, %c0_58] : memref<64x32xf32, #tpu.memory_space<vmem>>, vector<8x32xf32>
    tpu.vector_store %arg12[%298, %c0_58], %297 {strides = array<i32>} : memref<64x32xf32, #tpu.memory_space<vmem>>, vector<8x32xf32>,
    %300 = vector.shape_cast %291 : vector<8x1xi1> to vector<8x1xi1>
    %301 = vector.broadcast %300 : vector<8x1xi1> to vector<8x32xi1>
    %302 = arith.select %301, %289, %265 : vector<8x32xi1>, vector<8x32xf32>
    %303 = vector.shape_cast %291 : vector<8x1xi1> to vector<8x1xi1>
    %304 = vector.broadcast %303 : vector<8x1xi1> to vector<8x32xi1>
    %305 = arith.select %304, %287, %268 : vector<8x32xi1>, vector<8x32xf32>
    %c8_i32_59 = arith.constant 8 : i32
    %c0_60 = arith.constant 0 : index
    %c0_61 = arith.constant 0 : index
    %c0_62 = arith.constant 0 : index
    %306 = vector.load %arg10[%c0_60, %c0_61, %c0_62] : memref<2x8x32xf32, #tpu.memory_space<vmem>>, vector<1x8x32xf32>
    %307 = vector.shape_cast %306 : vector<1x8x32xf32> to vector<8x32xf32>
    %308 = vector.shape_cast %302 : vector<8x32xf32> to vector<1x8x32xf32>
    tpu.vector_store %arg10[%c0_60, %c0_61, %c0_62], %308 {strides = array<i32>} : memref<2x8x32xf32, #tpu.memory_space<vmem>>, vector<1x8x32xf32>,
    %c0_63 = arith.constant 0 : index
    %c0_64 = arith.constant 0 : index
    %c0_65 = arith.constant 0 : index
    %309 = vector.load %arg11[%c0_63, %c0_64, %c0_65] : memref<2x8x32xf32, #tpu.memory_space<vmem>>, vector<1x8x32xf32>
    %310 = vector.shape_cast %309 : vector<1x8x32xf32> to vector<8x32xf32>
    %311 = vector.shape_cast %305 : vector<8x32xf32> to vector<1x8x32xf32>
    tpu.vector_store %arg11[%c0_63, %c0_64, %c0_65], %311 {strides = array<i32>} : memref<2x8x32xf32, #tpu.memory_space<vmem>>, vector<1x8x32xf32>,
    %c0_66 = arith.constant 0 : index
    %c0_67 = arith.constant 0 : index
    %312 = vector.load %arg12[%c0_66, %c0_67] : memref<64x32xf32, #tpu.memory_space<vmem>>, vector<64x32xf32>
    %c0_68 = arith.constant 0 : index
    %c0_69 = arith.constant 0 : index
    %313 = vector.load %arg4[%c0_68, %c0_69] : memref<32x128xf32, #tpu.memory_space<vmem>>, vector<32x128xf32>
    %cst_70 = arith.constant dense<0.000000e+00> : vector<64x128xf32>
    %314 = tpu.matmul %312, %313, %cst_70 {dimension_numbers = #tpu.dot_dimension_numbers<[1], [0], [0], [1], [0, 0, 1, 1], [], []>} : vector<64x32xf32>, vector<32x128xf32>, vector<64x128xf32> -> vector<64x128xf32>
    %c0_71 = arith.constant 0 : index
    %c0_72 = arith.constant 0 : index
    %315 = vector.load %arg5[%c0_71, %c0_72] : memref<1x128xf32, #tpu.memory_space<vmem>>, vector<1x128xf32>
    %316 = vector.broadcast %315 : vector<1x128xf32> to vector<64x128xf32>
    %317 = arith.addf %314, %316 : vector<64x128xf32>
    %c0_73 = arith.constant 0 : index
    %c0_74 = arith.constant 0 : index
    %318 = vector.load %arg13[%c0_73, %c0_74] : memref<64x128xf32, #tpu.memory_space<vmem>>, vector<64x128xf32>
    tpu.vector_store %arg13[%c0_73, %c0_74], %317 {strides = array<i32>} : memref<64x128xf32, #tpu.memory_space<vmem>>, vector<64x128xf32>,
    %c0_75 = arith.constant 0 : index
    %c0_76 = arith.constant 0 : index
    %319 = vector.load %arg6[%c0_75, %c0_76] : memref<32x128xf32, #tpu.memory_space<vmem>>, vector<32x128xf32>
    %cst_77 = arith.constant 0.000000e+00 : f32
    %320 = vector.broadcast %cst_77 : f32 to vector<8x32xf32>
    %cst_78 = arith.constant 0.000000e+00 : f32
    %321 = vector.broadcast %cst_78 : f32 to vector<8x32xf32>
    %c0_i32_79 = arith.constant 0 : i32
    %c8_i32_80 = arith.constant 8 : i32
    %322 = arith.muli %c0_i32_79, %c8_i32_80 : i32
    %323 = tpu.assume_multiple %322, 8 : i32
    %324 = arith.index_cast %323 : i32 to index
    %c0_81 = arith.constant 0 : index
    %325 = vector.load %arg13[%324, %c0_81] : memref<64x128xf32, #tpu.memory_space<vmem>>, vector<8x128xf32>
    %cst_82 = arith.constant dense<0.000000e+00> : vector<8x128xf32>
    %326 = tpu.matmul %320, %319, %cst_82 {dimension_numbers = #tpu.dot_dimension_numbers<[1], [0], [0], [1], [0, 0, 1, 1], [], []>} : vector<8x32xf32>, vector<32x128xf32>, vector<8x128xf32> -> vector<8x128xf32>
    %327 = arith.addf %325, %326 : vector<8x128xf32>
    %328 = math.tanh %327 : vector<8x128xf32>
    %329 = arith.negf %327 : vector<8x128xf32>
    %330 = math.exp %329 : vector<8x128xf32>
    %cst_83 = arith.constant 1.000000e+00 : f32
    %331 = vector.broadcast %cst_83 : f32 to vector<8x128xf32>
    %332 = arith.addf %331, %330 : vector<8x128xf32>
    %333 = arith.divf %331, %332 : vector<8x128xf32>
    %334 = arith.select %6, %328, %333 : vector<8x128xi1>, vector<8x128xf32>
    %335 = vector.extract_strided_slice %334 {offsets = [0, 0], sizes = [8, 32], strides = [1, 1]} : vector<8x128xf32> to vector<8x32xf32>
    %336 = vector.extract_strided_slice %334 {offsets = [0, 32], sizes = [8, 32], strides = [1, 1]} : vector<8x128xf32> to vector<8x32xf32>
    %337 = vector.extract_strided_slice %334 {offsets = [0, 64], sizes = [8, 32], strides = [1, 1]} : vector<8x128xf32> to vector<8x32xf32>
    %338 = vector.extract_strided_slice %334 {offsets = [0, 96], sizes = [8, 32], strides = [1, 1]} : vector<8x128xf32> to vector<8x32xf32>
    %339 = arith.mulf %336, %321 : vector<8x32xf32>
    %340 = arith.mulf %335, %337 : vector<8x32xf32>
    %341 = arith.addf %339, %340 : vector<8x32xf32>
    %342 = math.tanh %341 : vector<8x32xf32>
    %343 = arith.mulf %338, %342 : vector<8x32xf32>
    %344 = vector.broadcast %c0_i32_79 : i32 to vector<8x1xi32>
    %345 = arith.cmpi slt, %344, %0 : vector<8x1xi32>
    %c8_i32_84 = arith.constant 8 : i32
    %346 = arith.muli %c0_i32_79, %c8_i32_84 : i32
    %347 = tpu.assume_multiple %346, 8 : i32
    %cst_85 = arith.constant 0.000000e+00 : f32
    %348 = vector.shape_cast %345 : vector<8x1xi1> to vector<8x1xi1>
    %349 = vector.broadcast %348 : vector<8x1xi1> to vector<8x32xi1>
    %350 = vector.broadcast %cst_85 : f32 to vector<8x32xf32>
    %351 = arith.select %349, %343, %350 : vector<8x32xi1>, vector<8x32xf32>
    %352 = arith.index_cast %347 : i32 to index
    %c0_86 = arith.constant 0 : index
    %353 = vector.load %arg12[%352, %c0_86] : memref<64x32xf32, #tpu.memory_space<vmem>>, vector<8x32xf32>
    tpu.vector_store %arg12[%352, %c0_86], %351 {strides = array<i32>} : memref<64x32xf32, #tpu.memory_space<vmem>>, vector<8x32xf32>,
    %354 = vector.shape_cast %345 : vector<8x1xi1> to vector<8x1xi1>
    %355 = vector.broadcast %354 : vector<8x1xi1> to vector<8x32xi1>
    %356 = arith.select %355, %343, %320 : vector<8x32xi1>, vector<8x32xf32>
    %357 = vector.shape_cast %345 : vector<8x1xi1> to vector<8x1xi1>
    %358 = vector.broadcast %357 : vector<8x1xi1> to vector<8x32xi1>
    %359 = arith.select %358, %341, %321 : vector<8x32xi1>, vector<8x32xf32>
    %c1_i32_87 = arith.constant 1 : i32
    %c8_i32_88 = arith.constant 8 : i32
    %360 = arith.muli %c1_i32_87, %c8_i32_88 : i32
    %361 = tpu.assume_multiple %360, 8 : i32
    %362 = arith.index_cast %361 : i32 to index
    %c0_89 = arith.constant 0 : index
    %363 = vector.load %arg13[%362, %c0_89] : memref<64x128xf32, #tpu.memory_space<vmem>>, vector<8x128xf32>
    %cst_90 = arith.constant dense<0.000000e+00> : vector<8x128xf32>
    %364 = tpu.matmul %356, %319, %cst_90 {dimension_numbers = #tpu.dot_dimension_numbers<[1], [0], [0], [1], [0, 0, 1, 1], [], []>} : vector<8x32xf32>, vector<32x128xf32>, vector<8x128xf32> -> vector<8x128xf32>
    %365 = arith.addf %363, %364 : vector<8x128xf32>
    %366 = math.tanh %365 : vector<8x128xf32>
    %367 = arith.negf %365 : vector<8x128xf32>
    %368 = math.exp %367 : vector<8x128xf32>
    %cst_91 = arith.constant 1.000000e+00 : f32
    %369 = vector.broadcast %cst_91 : f32 to vector<8x128xf32>
    %370 = arith.addf %369, %368 : vector<8x128xf32>
    %371 = arith.divf %369, %370 : vector<8x128xf32>
    %372 = arith.select %6, %366, %371 : vector<8x128xi1>, vector<8x128xf32>
    %373 = vector.extract_strided_slice %372 {offsets = [0, 0], sizes = [8, 32], strides = [1, 1]} : vector<8x128xf32> to vector<8x32xf32>
    %374 = vector.extract_strided_slice %372 {offsets = [0, 32], sizes = [8, 32], strides = [1, 1]} : vector<8x128xf32> to vector<8x32xf32>
    %375 = vector.extract_strided_slice %372 {offsets = [0, 64], sizes = [8, 32], strides = [1, 1]} : vector<8x128xf32> to vector<8x32xf32>
    %376 = vector.extract_strided_slice %372 {offsets = [0, 96], sizes = [8, 32], strides = [1, 1]} : vector<8x128xf32> to vector<8x32xf32>
    %377 = arith.mulf %374, %359 : vector<8x32xf32>
    %378 = arith.mulf %373, %375 : vector<8x32xf32>
    %379 = arith.addf %377, %378 : vector<8x32xf32>
    %380 = math.tanh %379 : vector<8x32xf32>
    %381 = arith.mulf %376, %380 : vector<8x32xf32>
    %382 = vector.broadcast %c1_i32_87 : i32 to vector<8x1xi32>
    %383 = arith.cmpi slt, %382, %0 : vector<8x1xi32>
    %c8_i32_92 = arith.constant 8 : i32
    %384 = arith.muli %c1_i32_87, %c8_i32_92 : i32
    %385 = tpu.assume_multiple %384, 8 : i32
    %cst_93 = arith.constant 0.000000e+00 : f32
    %386 = vector.shape_cast %383 : vector<8x1xi1> to vector<8x1xi1>
    %387 = vector.broadcast %386 : vector<8x1xi1> to vector<8x32xi1>
    %388 = vector.broadcast %cst_93 : f32 to vector<8x32xf32>
    %389 = arith.select %387, %381, %388 : vector<8x32xi1>, vector<8x32xf32>
    %390 = arith.index_cast %385 : i32 to index
    %c0_94 = arith.constant 0 : index
    %391 = vector.load %arg12[%390, %c0_94] : memref<64x32xf32, #tpu.memory_space<vmem>>, vector<8x32xf32>
    tpu.vector_store %arg12[%390, %c0_94], %389 {strides = array<i32>} : memref<64x32xf32, #tpu.memory_space<vmem>>, vector<8x32xf32>,
    %392 = vector.shape_cast %383 : vector<8x1xi1> to vector<8x1xi1>
    %393 = vector.broadcast %392 : vector<8x1xi1> to vector<8x32xi1>
    %394 = arith.select %393, %381, %356 : vector<8x32xi1>, vector<8x32xf32>
    %395 = vector.shape_cast %383 : vector<8x1xi1> to vector<8x1xi1>
    %396 = vector.broadcast %395 : vector<8x1xi1> to vector<8x32xi1>
    %397 = arith.select %396, %379, %359 : vector<8x32xi1>, vector<8x32xf32>
    %c2_i32_95 = arith.constant 2 : i32
    %c8_i32_96 = arith.constant 8 : i32
    %398 = arith.muli %c2_i32_95, %c8_i32_96 : i32
    %399 = tpu.assume_multiple %398, 8 : i32
    %400 = arith.index_cast %399 : i32 to index
    %c0_97 = arith.constant 0 : index
    %401 = vector.load %arg13[%400, %c0_97] : memref<64x128xf32, #tpu.memory_space<vmem>>, vector<8x128xf32>
    %cst_98 = arith.constant dense<0.000000e+00> : vector<8x128xf32>
    %402 = tpu.matmul %394, %319, %cst_98 {dimension_numbers = #tpu.dot_dimension_numbers<[1], [0], [0], [1], [0, 0, 1, 1], [], []>} : vector<8x32xf32>, vector<32x128xf32>, vector<8x128xf32> -> vector<8x128xf32>
    %403 = arith.addf %401, %402 : vector<8x128xf32>
    %404 = math.tanh %403 : vector<8x128xf32>
    %405 = arith.negf %403 : vector<8x128xf32>
    %406 = math.exp %405 : vector<8x128xf32>
    %cst_99 = arith.constant 1.000000e+00 : f32
    %407 = vector.broadcast %cst_99 : f32 to vector<8x128xf32>
    %408 = arith.addf %407, %406 : vector<8x128xf32>
    %409 = arith.divf %407, %408 : vector<8x128xf32>
    %410 = arith.select %6, %404, %409 : vector<8x128xi1>, vector<8x128xf32>
    %411 = vector.extract_strided_slice %410 {offsets = [0, 0], sizes = [8, 32], strides = [1, 1]} : vector<8x128xf32> to vector<8x32xf32>
    %412 = vector.extract_strided_slice %410 {offsets = [0, 32], sizes = [8, 32], strides = [1, 1]} : vector<8x128xf32> to vector<8x32xf32>
    %413 = vector.extract_strided_slice %410 {offsets = [0, 64], sizes = [8, 32], strides = [1, 1]} : vector<8x128xf32> to vector<8x32xf32>
    %414 = vector.extract_strided_slice %410 {offsets = [0, 96], sizes = [8, 32], strides = [1, 1]} : vector<8x128xf32> to vector<8x32xf32>
    %415 = arith.mulf %412, %397 : vector<8x32xf32>
    %416 = arith.mulf %411, %413 : vector<8x32xf32>
    %417 = arith.addf %415, %416 : vector<8x32xf32>
    %418 = math.tanh %417 : vector<8x32xf32>
    %419 = arith.mulf %414, %418 : vector<8x32xf32>
    %420 = vector.broadcast %c2_i32_95 : i32 to vector<8x1xi32>
    %421 = arith.cmpi slt, %420, %0 : vector<8x1xi32>
    %c8_i32_100 = arith.constant 8 : i32
    %422 = arith.muli %c2_i32_95, %c8_i32_100 : i32
    %423 = tpu.assume_multiple %422, 8 : i32
    %cst_101 = arith.constant 0.000000e+00 : f32
    %424 = vector.shape_cast %421 : vector<8x1xi1> to vector<8x1xi1>
    %425 = vector.broadcast %424 : vector<8x1xi1> to vector<8x32xi1>
    %426 = vector.broadcast %cst_101 : f32 to vector<8x32xf32>
    %427 = arith.select %425, %419, %426 : vector<8x32xi1>, vector<8x32xf32>
    %428 = arith.index_cast %423 : i32 to index
    %c0_102 = arith.constant 0 : index
    %429 = vector.load %arg12[%428, %c0_102] : memref<64x32xf32, #tpu.memory_space<vmem>>, vector<8x32xf32>
    tpu.vector_store %arg12[%428, %c0_102], %427 {strides = array<i32>} : memref<64x32xf32, #tpu.memory_space<vmem>>, vector<8x32xf32>,
    %430 = vector.shape_cast %421 : vector<8x1xi1> to vector<8x1xi1>
    %431 = vector.broadcast %430 : vector<8x1xi1> to vector<8x32xi1>
    %432 = arith.select %431, %419, %394 : vector<8x32xi1>, vector<8x32xf32>
    %433 = vector.shape_cast %421 : vector<8x1xi1> to vector<8x1xi1>
    %434 = vector.broadcast %433 : vector<8x1xi1> to vector<8x32xi1>
    %435 = arith.select %434, %417, %397 : vector<8x32xi1>, vector<8x32xf32>
    %c3_i32_103 = arith.constant 3 : i32
    %c8_i32_104 = arith.constant 8 : i32
    %436 = arith.muli %c3_i32_103, %c8_i32_104 : i32
    %437 = tpu.assume_multiple %436, 8 : i32
    %438 = arith.index_cast %437 : i32 to index
    %c0_105 = arith.constant 0 : index
    %439 = vector.load %arg13[%438, %c0_105] : memref<64x128xf32, #tpu.memory_space<vmem>>, vector<8x128xf32>
    %cst_106 = arith.constant dense<0.000000e+00> : vector<8x128xf32>
    %440 = tpu.matmul %432, %319, %cst_106 {dimension_numbers = #tpu.dot_dimension_numbers<[1], [0], [0], [1], [0, 0, 1, 1], [], []>} : vector<8x32xf32>, vector<32x128xf32>, vector<8x128xf32> -> vector<8x128xf32>
    %441 = arith.addf %439, %440 : vector<8x128xf32>
    %442 = math.tanh %441 : vector<8x128xf32>
    %443 = arith.negf %441 : vector<8x128xf32>
    %444 = math.exp %443 : vector<8x128xf32>
    %cst_107 = arith.constant 1.000000e+00 : f32
    %445 = vector.broadcast %cst_107 : f32 to vector<8x128xf32>
    %446 = arith.addf %445, %444 : vector<8x128xf32>
    %447 = arith.divf %445, %446 : vector<8x128xf32>
    %448 = arith.select %6, %442, %447 : vector<8x128xi1>, vector<8x128xf32>
    %449 = vector.extract_strided_slice %448 {offsets = [0, 0], sizes = [8, 32], strides = [1, 1]} : vector<8x128xf32> to vector<8x32xf32>
    %450 = vector.extract_strided_slice %448 {offsets = [0, 32], sizes = [8, 32], strides = [1, 1]} : vector<8x128xf32> to vector<8x32xf32>
    %451 = vector.extract_strided_slice %448 {offsets = [0, 64], sizes = [8, 32], strides = [1, 1]} : vector<8x128xf32> to vector<8x32xf32>
    %452 = vector.extract_strided_slice %448 {offsets = [0, 96], sizes = [8, 32], strides = [1, 1]} : vector<8x128xf32> to vector<8x32xf32>
    %453 = arith.mulf %450, %435 : vector<8x32xf32>
    %454 = arith.mulf %449, %451 : vector<8x32xf32>
    %455 = arith.addf %453, %454 : vector<8x32xf32>
    %456 = math.tanh %455 : vector<8x32xf32>
    %457 = arith.mulf %452, %456 : vector<8x32xf32>
    %458 = vector.broadcast %c3_i32_103 : i32 to vector<8x1xi32>
    %459 = arith.cmpi slt, %458, %0 : vector<8x1xi32>
    %c8_i32_108 = arith.constant 8 : i32
    %460 = arith.muli %c3_i32_103, %c8_i32_108 : i32
    %461 = tpu.assume_multiple %460, 8 : i32
    %cst_109 = arith.constant 0.000000e+00 : f32
    %462 = vector.shape_cast %459 : vector<8x1xi1> to vector<8x1xi1>
    %463 = vector.broadcast %462 : vector<8x1xi1> to vector<8x32xi1>
    %464 = vector.broadcast %cst_109 : f32 to vector<8x32xf32>
    %465 = arith.select %463, %457, %464 : vector<8x32xi1>, vector<8x32xf32>
    %466 = arith.index_cast %461 : i32 to index
    %c0_110 = arith.constant 0 : index
    %467 = vector.load %arg12[%466, %c0_110] : memref<64x32xf32, #tpu.memory_space<vmem>>, vector<8x32xf32>
    tpu.vector_store %arg12[%466, %c0_110], %465 {strides = array<i32>} : memref<64x32xf32, #tpu.memory_space<vmem>>, vector<8x32xf32>,
    %468 = vector.shape_cast %459 : vector<8x1xi1> to vector<8x1xi1>
    %469 = vector.broadcast %468 : vector<8x1xi1> to vector<8x32xi1>
    %470 = arith.select %469, %457, %432 : vector<8x32xi1>, vector<8x32xf32>
    %471 = vector.shape_cast %459 : vector<8x1xi1> to vector<8x1xi1>
    %472 = vector.broadcast %471 : vector<8x1xi1> to vector<8x32xi1>
    %473 = arith.select %472, %455, %435 : vector<8x32xi1>, vector<8x32xf32>
    %c4_i32_111 = arith.constant 4 : i32
    %c8_i32_112 = arith.constant 8 : i32
    %474 = arith.muli %c4_i32_111, %c8_i32_112 : i32
    %475 = tpu.assume_multiple %474, 8 : i32
    %476 = arith.index_cast %475 : i32 to index
    %c0_113 = arith.constant 0 : index
    %477 = vector.load %arg13[%476, %c0_113] : memref<64x128xf32, #tpu.memory_space<vmem>>, vector<8x128xf32>
    %cst_114 = arith.constant dense<0.000000e+00> : vector<8x128xf32>
    %478 = tpu.matmul %470, %319, %cst_114 {dimension_numbers = #tpu.dot_dimension_numbers<[1], [0], [0], [1], [0, 0, 1, 1], [], []>} : vector<8x32xf32>, vector<32x128xf32>, vector<8x128xf32> -> vector<8x128xf32>
    %479 = arith.addf %477, %478 : vector<8x128xf32>
    %480 = math.tanh %479 : vector<8x128xf32>
    %481 = arith.negf %479 : vector<8x128xf32>
    %482 = math.exp %481 : vector<8x128xf32>
    %cst_115 = arith.constant 1.000000e+00 : f32
    %483 = vector.broadcast %cst_115 : f32 to vector<8x128xf32>
    %484 = arith.addf %483, %482 : vector<8x128xf32>
    %485 = arith.divf %483, %484 : vector<8x128xf32>
    %486 = arith.select %6, %480, %485 : vector<8x128xi1>, vector<8x128xf32>
    %487 = vector.extract_strided_slice %486 {offsets = [0, 0], sizes = [8, 32], strides = [1, 1]} : vector<8x128xf32> to vector<8x32xf32>
    %488 = vector.extract_strided_slice %486 {offsets = [0, 32], sizes = [8, 32], strides = [1, 1]} : vector<8x128xf32> to vector<8x32xf32>
    %489 = vector.extract_strided_slice %486 {offsets = [0, 64], sizes = [8, 32], strides = [1, 1]} : vector<8x128xf32> to vector<8x32xf32>
    %490 = vector.extract_strided_slice %486 {offsets = [0, 96], sizes = [8, 32], strides = [1, 1]} : vector<8x128xf32> to vector<8x32xf32>
    %491 = arith.mulf %488, %473 : vector<8x32xf32>
    %492 = arith.mulf %487, %489 : vector<8x32xf32>
    %493 = arith.addf %491, %492 : vector<8x32xf32>
    %494 = math.tanh %493 : vector<8x32xf32>
    %495 = arith.mulf %490, %494 : vector<8x32xf32>
    %496 = vector.broadcast %c4_i32_111 : i32 to vector<8x1xi32>
    %497 = arith.cmpi slt, %496, %0 : vector<8x1xi32>
    %c8_i32_116 = arith.constant 8 : i32
    %498 = arith.muli %c4_i32_111, %c8_i32_116 : i32
    %499 = tpu.assume_multiple %498, 8 : i32
    %cst_117 = arith.constant 0.000000e+00 : f32
    %500 = vector.shape_cast %497 : vector<8x1xi1> to vector<8x1xi1>
    %501 = vector.broadcast %500 : vector<8x1xi1> to vector<8x32xi1>
    %502 = vector.broadcast %cst_117 : f32 to vector<8x32xf32>
    %503 = arith.select %501, %495, %502 : vector<8x32xi1>, vector<8x32xf32>
    %504 = arith.index_cast %499 : i32 to index
    %c0_118 = arith.constant 0 : index
    %505 = vector.load %arg12[%504, %c0_118] : memref<64x32xf32, #tpu.memory_space<vmem>>, vector<8x32xf32>
    tpu.vector_store %arg12[%504, %c0_118], %503 {strides = array<i32>} : memref<64x32xf32, #tpu.memory_space<vmem>>, vector<8x32xf32>,
    %506 = vector.shape_cast %497 : vector<8x1xi1> to vector<8x1xi1>
    %507 = vector.broadcast %506 : vector<8x1xi1> to vector<8x32xi1>
    %508 = arith.select %507, %495, %470 : vector<8x32xi1>, vector<8x32xf32>
    %509 = vector.shape_cast %497 : vector<8x1xi1> to vector<8x1xi1>
    %510 = vector.broadcast %509 : vector<8x1xi1> to vector<8x32xi1>
    %511 = arith.select %510, %493, %473 : vector<8x32xi1>, vector<8x32xf32>
    %c5_i32_119 = arith.constant 5 : i32
    %c8_i32_120 = arith.constant 8 : i32
    %512 = arith.muli %c5_i32_119, %c8_i32_120 : i32
    %513 = tpu.assume_multiple %512, 8 : i32
    %514 = arith.index_cast %513 : i32 to index
    %c0_121 = arith.constant 0 : index
    %515 = vector.load %arg13[%514, %c0_121] : memref<64x128xf32, #tpu.memory_space<vmem>>, vector<8x128xf32>
    %cst_122 = arith.constant dense<0.000000e+00> : vector<8x128xf32>
    %516 = tpu.matmul %508, %319, %cst_122 {dimension_numbers = #tpu.dot_dimension_numbers<[1], [0], [0], [1], [0, 0, 1, 1], [], []>} : vector<8x32xf32>, vector<32x128xf32>, vector<8x128xf32> -> vector<8x128xf32>
    %517 = arith.addf %515, %516 : vector<8x128xf32>
    %518 = math.tanh %517 : vector<8x128xf32>
    %519 = arith.negf %517 : vector<8x128xf32>
    %520 = math.exp %519 : vector<8x128xf32>
    %cst_123 = arith.constant 1.000000e+00 : f32
    %521 = vector.broadcast %cst_123 : f32 to vector<8x128xf32>
    %522 = arith.addf %521, %520 : vector<8x128xf32>
    %523 = arith.divf %521, %522 : vector<8x128xf32>
    %524 = arith.select %6, %518, %523 : vector<8x128xi1>, vector<8x128xf32>
    %525 = vector.extract_strided_slice %524 {offsets = [0, 0], sizes = [8, 32], strides = [1, 1]} : vector<8x128xf32> to vector<8x32xf32>
    %526 = vector.extract_strided_slice %524 {offsets = [0, 32], sizes = [8, 32], strides = [1, 1]} : vector<8x128xf32> to vector<8x32xf32>
    %527 = vector.extract_strided_slice %524 {offsets = [0, 64], sizes = [8, 32], strides = [1, 1]} : vector<8x128xf32> to vector<8x32xf32>
    %528 = vector.extract_strided_slice %524 {offsets = [0, 96], sizes = [8, 32], strides = [1, 1]} : vector<8x128xf32> to vector<8x32xf32>
    %529 = arith.mulf %526, %511 : vector<8x32xf32>
    %530 = arith.mulf %525, %527 : vector<8x32xf32>
    %531 = arith.addf %529, %530 : vector<8x32xf32>
    %532 = math.tanh %531 : vector<8x32xf32>
    %533 = arith.mulf %528, %532 : vector<8x32xf32>
    %534 = vector.broadcast %c5_i32_119 : i32 to vector<8x1xi32>
    %535 = arith.cmpi slt, %534, %0 : vector<8x1xi32>
    %c8_i32_124 = arith.constant 8 : i32
    %536 = arith.muli %c5_i32_119, %c8_i32_124 : i32
    %537 = tpu.assume_multiple %536, 8 : i32
    %cst_125 = arith.constant 0.000000e+00 : f32
    %538 = vector.shape_cast %535 : vector<8x1xi1> to vector<8x1xi1>
    %539 = vector.broadcast %538 : vector<8x1xi1> to vector<8x32xi1>
    %540 = vector.broadcast %cst_125 : f32 to vector<8x32xf32>
    %541 = arith.select %539, %533, %540 : vector<8x32xi1>, vector<8x32xf32>
    %542 = arith.index_cast %537 : i32 to index
    %c0_126 = arith.constant 0 : index
    %543 = vector.load %arg12[%542, %c0_126] : memref<64x32xf32, #tpu.memory_space<vmem>>, vector<8x32xf32>
    tpu.vector_store %arg12[%542, %c0_126], %541 {strides = array<i32>} : memref<64x32xf32, #tpu.memory_space<vmem>>, vector<8x32xf32>,
    %544 = vector.shape_cast %535 : vector<8x1xi1> to vector<8x1xi1>
    %545 = vector.broadcast %544 : vector<8x1xi1> to vector<8x32xi1>
    %546 = arith.select %545, %533, %508 : vector<8x32xi1>, vector<8x32xf32>
    %547 = vector.shape_cast %535 : vector<8x1xi1> to vector<8x1xi1>
    %548 = vector.broadcast %547 : vector<8x1xi1> to vector<8x32xi1>
    %549 = arith.select %548, %531, %511 : vector<8x32xi1>, vector<8x32xf32>
    %c6_i32_127 = arith.constant 6 : i32
    %c8_i32_128 = arith.constant 8 : i32
    %550 = arith.muli %c6_i32_127, %c8_i32_128 : i32
    %551 = tpu.assume_multiple %550, 8 : i32
    %552 = arith.index_cast %551 : i32 to index
    %c0_129 = arith.constant 0 : index
    %553 = vector.load %arg13[%552, %c0_129] : memref<64x128xf32, #tpu.memory_space<vmem>>, vector<8x128xf32>
    %cst_130 = arith.constant dense<0.000000e+00> : vector<8x128xf32>
    %554 = tpu.matmul %546, %319, %cst_130 {dimension_numbers = #tpu.dot_dimension_numbers<[1], [0], [0], [1], [0, 0, 1, 1], [], []>} : vector<8x32xf32>, vector<32x128xf32>, vector<8x128xf32> -> vector<8x128xf32>
    %555 = arith.addf %553, %554 : vector<8x128xf32>
    %556 = math.tanh %555 : vector<8x128xf32>
    %557 = arith.negf %555 : vector<8x128xf32>
    %558 = math.exp %557 : vector<8x128xf32>
    %cst_131 = arith.constant 1.000000e+00 : f32
    %559 = vector.broadcast %cst_131 : f32 to vector<8x128xf32>
    %560 = arith.addf %559, %558 : vector<8x128xf32>
    %561 = arith.divf %559, %560 : vector<8x128xf32>
    %562 = arith.select %6, %556, %561 : vector<8x128xi1>, vector<8x128xf32>
    %563 = vector.extract_strided_slice %562 {offsets = [0, 0], sizes = [8, 32], strides = [1, 1]} : vector<8x128xf32> to vector<8x32xf32>
    %564 = vector.extract_strided_slice %562 {offsets = [0, 32], sizes = [8, 32], strides = [1, 1]} : vector<8x128xf32> to vector<8x32xf32>
    %565 = vector.extract_strided_slice %562 {offsets = [0, 64], sizes = [8, 32], strides = [1, 1]} : vector<8x128xf32> to vector<8x32xf32>
    %566 = vector.extract_strided_slice %562 {offsets = [0, 96], sizes = [8, 32], strides = [1, 1]} : vector<8x128xf32> to vector<8x32xf32>
    %567 = arith.mulf %564, %549 : vector<8x32xf32>
    %568 = arith.mulf %563, %565 : vector<8x32xf32>
    %569 = arith.addf %567, %568 : vector<8x32xf32>
    %570 = math.tanh %569 : vector<8x32xf32>
    %571 = arith.mulf %566, %570 : vector<8x32xf32>
    %572 = vector.broadcast %c6_i32_127 : i32 to vector<8x1xi32>
    %573 = arith.cmpi slt, %572, %0 : vector<8x1xi32>
    %c8_i32_132 = arith.constant 8 : i32
    %574 = arith.muli %c6_i32_127, %c8_i32_132 : i32
    %575 = tpu.assume_multiple %574, 8 : i32
    %cst_133 = arith.constant 0.000000e+00 : f32
    %576 = vector.shape_cast %573 : vector<8x1xi1> to vector<8x1xi1>
    %577 = vector.broadcast %576 : vector<8x1xi1> to vector<8x32xi1>
    %578 = vector.broadcast %cst_133 : f32 to vector<8x32xf32>
    %579 = arith.select %577, %571, %578 : vector<8x32xi1>, vector<8x32xf32>
    %580 = arith.index_cast %575 : i32 to index
    %c0_134 = arith.constant 0 : index
    %581 = vector.load %arg12[%580, %c0_134] : memref<64x32xf32, #tpu.memory_space<vmem>>, vector<8x32xf32>
    tpu.vector_store %arg12[%580, %c0_134], %579 {strides = array<i32>} : memref<64x32xf32, #tpu.memory_space<vmem>>, vector<8x32xf32>,
    %582 = vector.shape_cast %573 : vector<8x1xi1> to vector<8x1xi1>
    %583 = vector.broadcast %582 : vector<8x1xi1> to vector<8x32xi1>
    %584 = arith.select %583, %571, %546 : vector<8x32xi1>, vector<8x32xf32>
    %585 = vector.shape_cast %573 : vector<8x1xi1> to vector<8x1xi1>
    %586 = vector.broadcast %585 : vector<8x1xi1> to vector<8x32xi1>
    %587 = arith.select %586, %569, %549 : vector<8x32xi1>, vector<8x32xf32>
    %c7_i32_135 = arith.constant 7 : i32
    %c8_i32_136 = arith.constant 8 : i32
    %588 = arith.muli %c7_i32_135, %c8_i32_136 : i32
    %589 = tpu.assume_multiple %588, 8 : i32
    %590 = arith.index_cast %589 : i32 to index
    %c0_137 = arith.constant 0 : index
    %591 = vector.load %arg13[%590, %c0_137] : memref<64x128xf32, #tpu.memory_space<vmem>>, vector<8x128xf32>
    %cst_138 = arith.constant dense<0.000000e+00> : vector<8x128xf32>
    %592 = tpu.matmul %584, %319, %cst_138 {dimension_numbers = #tpu.dot_dimension_numbers<[1], [0], [0], [1], [0, 0, 1, 1], [], []>} : vector<8x32xf32>, vector<32x128xf32>, vector<8x128xf32> -> vector<8x128xf32>
    %593 = arith.addf %591, %592 : vector<8x128xf32>
    %594 = math.tanh %593 : vector<8x128xf32>
    %595 = arith.negf %593 : vector<8x128xf32>
    %596 = math.exp %595 : vector<8x128xf32>
    %cst_139 = arith.constant 1.000000e+00 : f32
    %597 = vector.broadcast %cst_139 : f32 to vector<8x128xf32>
    %598 = arith.addf %597, %596 : vector<8x128xf32>
    %599 = arith.divf %597, %598 : vector<8x128xf32>
    %600 = arith.select %6, %594, %599 : vector<8x128xi1>, vector<8x128xf32>
    %601 = vector.extract_strided_slice %600 {offsets = [0, 0], sizes = [8, 32], strides = [1, 1]} : vector<8x128xf32> to vector<8x32xf32>
    %602 = vector.extract_strided_slice %600 {offsets = [0, 32], sizes = [8, 32], strides = [1, 1]} : vector<8x128xf32> to vector<8x32xf32>
    %603 = vector.extract_strided_slice %600 {offsets = [0, 64], sizes = [8, 32], strides = [1, 1]} : vector<8x128xf32> to vector<8x32xf32>
    %604 = vector.extract_strided_slice %600 {offsets = [0, 96], sizes = [8, 32], strides = [1, 1]} : vector<8x128xf32> to vector<8x32xf32>
    %605 = arith.mulf %602, %587 : vector<8x32xf32>
    %606 = arith.mulf %601, %603 : vector<8x32xf32>
    %607 = arith.addf %605, %606 : vector<8x32xf32>
    %608 = math.tanh %607 : vector<8x32xf32>
    %609 = arith.mulf %604, %608 : vector<8x32xf32>
    %610 = vector.broadcast %c7_i32_135 : i32 to vector<8x1xi32>
    %611 = arith.cmpi slt, %610, %0 : vector<8x1xi32>
    %c8_i32_140 = arith.constant 8 : i32
    %612 = arith.muli %c7_i32_135, %c8_i32_140 : i32
    %613 = tpu.assume_multiple %612, 8 : i32
    %cst_141 = arith.constant 0.000000e+00 : f32
    %614 = vector.shape_cast %611 : vector<8x1xi1> to vector<8x1xi1>
    %615 = vector.broadcast %614 : vector<8x1xi1> to vector<8x32xi1>
    %616 = vector.broadcast %cst_141 : f32 to vector<8x32xf32>
    %617 = arith.select %615, %609, %616 : vector<8x32xi1>, vector<8x32xf32>
    %618 = arith.index_cast %613 : i32 to index
    %c0_142 = arith.constant 0 : index
    %619 = vector.load %arg12[%618, %c0_142] : memref<64x32xf32, #tpu.memory_space<vmem>>, vector<8x32xf32>
    tpu.vector_store %arg12[%618, %c0_142], %617 {strides = array<i32>} : memref<64x32xf32, #tpu.memory_space<vmem>>, vector<8x32xf32>,
    %620 = vector.shape_cast %611 : vector<8x1xi1> to vector<8x1xi1>
    %621 = vector.broadcast %620 : vector<8x1xi1> to vector<8x32xi1>
    %622 = arith.select %621, %609, %584 : vector<8x32xi1>, vector<8x32xf32>
    %623 = vector.shape_cast %611 : vector<8x1xi1> to vector<8x1xi1>
    %624 = vector.broadcast %623 : vector<8x1xi1> to vector<8x32xi1>
    %625 = arith.select %624, %607, %587 : vector<8x32xi1>, vector<8x32xf32>
    %c8_i32_143 = arith.constant 8 : i32
    %c1 = arith.constant 1 : index
    %c0_144 = arith.constant 0 : index
    %c0_145 = arith.constant 0 : index
    %626 = vector.load %arg10[%c1, %c0_144, %c0_145] : memref<2x8x32xf32, #tpu.memory_space<vmem>>, vector<1x8x32xf32>
    %627 = vector.shape_cast %626 : vector<1x8x32xf32> to vector<8x32xf32>
    %628 = vector.shape_cast %622 : vector<8x32xf32> to vector<1x8x32xf32>
    tpu.vector_store %arg10[%c1, %c0_144, %c0_145], %628 {strides = array<i32>} : memref<2x8x32xf32, #tpu.memory_space<vmem>>, vector<1x8x32xf32>,
    %c1_146 = arith.constant 1 : index
    %c0_147 = arith.constant 0 : index
    %c0_148 = arith.constant 0 : index
    %629 = vector.load %arg11[%c1_146, %c0_147, %c0_148] : memref<2x8x32xf32, #tpu.memory_space<vmem>>, vector<1x8x32xf32>
    %630 = vector.shape_cast %629 : vector<1x8x32xf32> to vector<8x32xf32>
    %631 = vector.shape_cast %625 : vector<8x32xf32> to vector<1x8x32xf32>
    tpu.vector_store %arg11[%c1_146, %c0_147, %c0_148], %631 {strides = array<i32>} : memref<2x8x32xf32, #tpu.memory_space<vmem>>, vector<1x8x32xf32>,
    %c0_149 = arith.constant 0 : index
    %c0_150 = arith.constant 0 : index
    %632 = vector.load %arg12[%c0_149, %c0_150] : memref<64x32xf32, #tpu.memory_space<vmem>>, vector<64x32xf32>
    %c0_151 = arith.constant 0 : index
    %c0_152 = arith.constant 0 : index
    %633 = vector.load %arg7[%c0_151, %c0_152] : memref<1x32xf32, #tpu.memory_space<vmem>>, vector<1x32xf32>
    %634 = vector.broadcast %633 : vector<1x32xf32> to vector<64x32xf32>
    %635 = arith.mulf %632, %634 : vector<64x32xf32>
    %cst_153 = arith.constant dense<0.000000e+00> : vector<64xf32>
    %636 = vector.multi_reduction <add>, %635, %cst_153 [1] : vector<64x32xf32> to vector<64xf32>
    %637 = vector.shape_cast %636 : vector<64xf32> to vector<64x1xf32>
    %c0_154 = arith.constant 0 : index
    %c0_155 = arith.constant 0 : index
    %638 = vector.load %arg8[%c0_154, %c0_155] : memref<1x1xf32, #tpu.memory_space<vmem>>, vector<1x1xf32>
    %639 = vector.broadcast %638 : vector<1x1xf32> to vector<64x1xf32>
    %640 = arith.addf %637, %639 : vector<64x1xf32>
    %641 = arith.negf %640 : vector<64x1xf32>
    %642 = math.exp %641 : vector<64x1xf32>
    %cst_156 = arith.constant 1.000000e+00 : f32
    %643 = vector.broadcast %cst_156 : f32 to vector<64x1xf32>
    %644 = arith.addf %643, %642 : vector<64x1xf32>
    %645 = arith.divf %643, %644 : vector<64x1xf32>
    %646 = vector.broadcast %645 : vector<64x1xf32> to vector<64x32xf32>
    %647 = arith.mulf %632, %646 : vector<64x32xf32>
    %648 = vector.shape_cast %647 : vector<64x32xf32> to vector<8x8x32xf32>
    %c0_157 = arith.constant 0 : index
    %c0_158 = arith.constant 0 : index
    %c0_159 = arith.constant 0 : index
    %649 = vector.load %arg9[%c0_157, %c0_158, %c0_159] : memref<8x8x32xf32, #tpu.memory_space<vmem>>, vector<8x8x32xf32>
    tpu.vector_store %arg9[%c0_157, %c0_158, %c0_159], %648 {strides = array<i32>} : memref<8x8x32xf32, #tpu.memory_space<vmem>>, vector<8x8x32xf32>,
    return
  }
  func.func @transform_0(%arg0: i32) -> (i32, i32) {
    %c0_i32 = arith.constant 0 : i32
    %c0_i32_0 = arith.constant 0 : i32
    return %arg0, %c0_i32 : i32, i32
  }
  func.func @transform_1(%arg0: i32) -> (i32, i32, i32) {
    %c0_i32 = arith.constant 0 : i32
    %c0_i32_0 = arith.constant 0 : i32
    %c0_i32_1 = arith.constant 0 : i32
    return %c0_i32, %arg0, %c0_i32_0 : i32, i32, i32
  }
  func.func @transform_2(%arg0: i32) -> (i32, i32) {
    %c0_i32 = arith.constant 0 : i32
    %c0_i32_0 = arith.constant 0 : i32
    %c0_i32_1 = arith.constant 0 : i32
    return %c0_i32, %c0_i32_0 : i32, i32
  }
  func.func @transform_3(%arg0: i32) -> (i32, i32) {
    %c0_i32 = arith.constant 0 : i32
    %c0_i32_0 = arith.constant 0 : i32
    %c0_i32_1 = arith.constant 0 : i32
    return %c0_i32, %c0_i32_0 : i32, i32
  }
  func.func @transform_4(%arg0: i32) -> (i32, i32) {
    %c0_i32 = arith.constant 0 : i32
    %c0_i32_0 = arith.constant 0 : i32
    %c0_i32_1 = arith.constant 0 : i32
    return %c0_i32, %c0_i32_0 : i32, i32
  }
  func.func @transform_5(%arg0: i32) -> (i32, i32) {
    %c0_i32 = arith.constant 0 : i32
    %c0_i32_0 = arith.constant 0 : i32
    %c0_i32_1 = arith.constant 0 : i32
    return %c0_i32, %c0_i32_0 : i32, i32
  }
  func.func @transform_6(%arg0: i32) -> (i32, i32) {
    %c0_i32 = arith.constant 0 : i32
    %c0_i32_0 = arith.constant 0 : i32
    %c0_i32_1 = arith.constant 0 : i32
    return %c0_i32, %c0_i32_0 : i32, i32
  }
  func.func @transform_7(%arg0: i32) -> (i32, i32) {
    %c0_i32 = arith.constant 0 : i32
    %c0_i32_0 = arith.constant 0 : i32
    %c0_i32_1 = arith.constant 0 : i32
    return %c0_i32, %c0_i32_0 : i32, i32
  }
  func.func @transform_8(%arg0: i32) -> (i32, i32, i32) {
    %c0_i32 = arith.constant 0 : i32
    %c0_i32_0 = arith.constant 0 : i32
    %c0_i32_1 = arith.constant 0 : i32
    return %c0_i32, %arg0, %c0_i32_0 : i32, i32, i32
  }
  func.func @transform_9(%arg0: i32) -> (i32, i32, i32) {
    %c0_i32 = arith.constant 0 : i32
    %c0_i32_0 = arith.constant 0 : i32
    %c0_i32_1 = arith.constant 0 : i32
    return %c0_i32, %arg0, %c0_i32_0 : i32, i32, i32
  }
  func.func @transform_10(%arg0: i32) -> (i32, i32, i32) {
    %c0_i32 = arith.constant 0 : i32
    %c0_i32_0 = arith.constant 0 : i32
    %c0_i32_1 = arith.constant 0 : i32
    return %c0_i32, %arg0, %c0_i32_0 : i32, i32, i32
  }
}

</mosaic_0001>

<bundles_post_ra>
// kernel: tpu_custom_call.1
= control target key start
LH: loop header
LB: loop body
LE: loop exit
PB: predicated region body
PF: predicated region fallthrough
CT: control target
= control target key end

     0   :  { %s3764_s0 = inlined_call_operand.vmem [shape: s32[8,1], index: 0, kind: input, shape index: {}]   ;;  %s3765_s1 = inlined_call_operand.hbm [shape: f32[8,8,128], index: 1, kind: input, shape index: {}]   ;;  %s3766_s2 = inlined_call_operand.hbm [shape: f32[32,128], index: 2, kind: input, shape index: {}]   ;;  %s3767_s3 = inlined_call_operand.hbm [shape: f32[32,128], index: 3, kind: input, shape index: {}]   ;;  %s3768_s4 = inlined_call_operand.vmem [shape: f32[1,128], index: 4, kind: input, shape index: {}]   ;;  %s3769_s5 = inlined_call_operand.hbm [shape: f32[32,128], index: 5, kind: input, shape index: {}]   ;;  %s3770_s6 = inlined_call_operand.vmem [shape: f32[1,32], index: 6, kind: input, shape index: {}]   ;;  %s3771_s7 = inlined_call_operand.<no memory space> [shape: f32[1,1], index: 7, kind: input, shape index: {}]   ;;  %s3772_s8 = inlined_call_operand.hbm [shape: f32[8,8,32], index: 8, kind: output, shape index: {0}]   ;;  %s3773_s9 = inlined_call_operand.hbm [shape: f32[2,8,32], index: 9, kind: output, shape index: {1}]   ;;  %s3774_s10 = inlined_call_operand.hbm [shape: f32[2,8,32], index: 10, kind: output, shape index: {2}]  }
   0x1   :  { %v16_v0 = vstv %s3771_s7 }
   0x2   :  { %17 = vst [vmem:[#allocation4] sm:$0x1] %v16_v0 }
   0x3   :  { %18 = vsyncpa [#allocation6], 0 }
   0x4   :  { %19 = vsyncpa [#allocation9], 0 }
   0x5   :  { %20 = vsyncpa [#allocation12], 0 }
   0x6   :  { %21 = vsyncpa [#allocation7], 0 }
   0x7   :  { %22 = vsyncpa [#allocation15], 0  ;;  %s2978_s15 = smov [#allocation8]   ;;  %s2979_s17 = smov [#allocation5]  }
   0x8   :  { %s42_s16 = sshll.u32 %s2978_s15, 4  ;;  %s30_s18 = sshll.u32 %s2979_s17, 4  ;;  %s43_s16 = int_to_ptr.vmem [resolvable:$true] %s42_s16  ;;  %s31_s18 = int_to_ptr.vmem [resolvable:$true] %s30_s18 }
   0x9   :  { %s2836_s19 = scalar_lea.vmem %s43_s16, 512  ;;  %p2841_p1 = scmp.lt.s32.totalorder %s43_s16, %s43_s16 }
   0xa   :  { %p2837_p0 = scmp.ne.s32.totalorder %s43_s16, %s2836_s19  ;;  %p2842_p2 = scmp.lt.s32.totalorder %s2836_s19, %s2836_s19 }
   0xc   :  { %p2843_p3 = por %p2842_p2, %p2841_p1 }
   0xe   :  { %p2844_p4 = pnand %p2843_p3, %p2837_p0 }
  0x10   :  { %2847 = shalt.err (!%p2844_p4)
}
  0x11   :  { %s2980_s7 = smov 128   ;;  %s2981_s20 = smov 8  }
  0x12   :  { %48 = dma.hbm_to_vmem [thread:$0]  %s3766_s2, 512, %s43_s16, [#allocation9], %s2980_s7, %s2980_s7, %s2981_s20  }
  0x13   :  { %s2856_s23 = scalar_lea.vmem %s31_s18, 1024  ;;  %p2861_p6 = scmp.lt.s32.totalorder %s31_s18, %s31_s18 }
  0x14   :  { %p2857_p5 = scmp.ne.s32.totalorder %s31_s18, %s2856_s23  ;;  %p2862_p7 = scmp.lt.s32.totalorder %s2856_s23, %s2856_s23 }
  0x16   :  { %p2863_p8 = por %p2862_p7, %p2861_p6 }
  0x18   :  { %p2864_p9 = pnand %p2863_p8, %p2857_p5 }
  0x1a   :  { %2867 = shalt.err (!%p2864_p9)
}
  0x1b   :  { %36 = dma.hbm_to_vmem [thread:$0]  %s3765_s1, 1024, %s31_s18, [#allocation6], %s2980_s7, %s2980_s7, %s2981_s20  }
  0x1c   :  { %s2982_s26 = smov [#allocation10]   ;;  %s2983_s28 = smov [#allocation11]  }
  0x1d   :  { %s54_s27 = sshll.u32 %s2982_s26, 4  ;;  %s68_s29 = sshll.u32 %s2983_s28, 4  ;;  %s55_s27 = int_to_ptr.vmem [resolvable:$true] %s54_s27  ;;  %s69_s29 = int_to_ptr.vmem [resolvable:$true] %s68_s29 }
  0x1e   :  { %s2876_s2 = scalar_lea.vmem %s55_s27, 512  ;;  %p2881_p11 = scmp.lt.s32.totalorder %s55_s27, %s55_s27 }
  0x1f   :  { %p2877_p10 = scmp.ne.s32.totalorder %s55_s27, %s2876_s2  ;;  %p2882_p12 = scmp.lt.s32.totalorder %s2876_s2, %s2876_s2 }
  0x21   :  { %p2883_p13 = por %p2882_p12, %p2881_p11 }
  0x23   :  { %p2884_p0 = pnand %p2883_p13, %p2877_p10 }
  0x25   :  { %2887 = shalt.err (!%p2884_p0)
}
  0x26   :  { %60 = dma.hbm_to_vmem [thread:$0]  %s3767_s3, 512, %s55_s27, [#allocation9], %s2980_s7, %s2980_s7, %s2981_s20  }
  0x27   :  { %s2896_s1 = scalar_lea.vmem %s69_s29, 512  ;;  %p2901_p2 = scmp.lt.s32.totalorder %s69_s29, %s69_s29 }
  0x28   :  { %p2897_p1 = scmp.ne.s32.totalorder %s69_s29, %s2896_s1  ;;  %p2902_p3 = scmp.lt.s32.totalorder %s2896_s1, %s2896_s1 }
  0x2a   :  { %p2903_p4 = por %p2902_p3, %p2901_p2 }
  0x2c   :  { %p2904_p5 = pnand %p2903_p4, %p2897_p1 }
  0x2e   :  { %2907 = shalt.err (!%p2904_p5)
}
  0x2f   :  { %74 = dma.hbm_to_vmem [thread:$0]  %s3769_s5, 512, %s69_s29, [#allocation12], %s2980_s7, %s2980_s7, %s2981_s20  }
  0x30   :  { %2968 = dma.done.wait [#allocation6], 1024  }
  0x31   :  { %2969 = vsyncadd [#allocation6], 4294966272 }
  0x32   :  { %2970 = dma.done.wait [#allocation9], 1024  }
  0x33   :  { %2971 = vsyncadd [#allocation9], 4294966272 }
  0x34   :  { %2972 = dma.done.wait [#allocation12], 512  }
  0x35   :  { %2973 = vsyncadd [#allocation12], 4294966784  ;;  %v2984_v1 = vmov 0.0   ;;  %vm2985_vm0 = vmmov 0   ;;  %v3081_v2 = vld [vmem:[#allocation8 + $0x18] sm:$0xff]  ;;  %v3083_v3 = vld [vmem:[#allocation8 + $0x10] sm:$0xff]  ;;  %v92_v16 = vlaneseq }
  0x36   :  { %2455 = vmatprep.subr.mxu0 %v2984_v1  ;;  %2463 = vmatprep.mubr.msk.f32.mxu0 %vm2985_vm0, %v2984_v1  ;;  %v3088_v4 = vld [vmem:[#allocation8 + $0x8] sm:$0xff]  ;;  %v3094_v5 = vld [vmem:[#allocation8] sm:$0xff]  ;;  %v2986_v7 = vmov 0   ;;  %s2988_s14 = smov 32   ;;  %vm102_vm6 = vcmask 261120   ;;  %v331_v56 = vld [vmem:[#allocation5 + $0x10] sm:$0xff] }
  0x37   :  { %2466 = vmatprep.subr.mxu1 %v2984_v1  ;;  %2474 = vmatprep.mubr.msk.f32.mxu1 %vm2985_vm0, %v2984_v1  ;;  %v3119_v6 = vld [vmem:[%s3764_s0] sm:$0xff]  ;;  %v93_v17 = vand.u32 127, %v92_v16  ;;  %s2987_s0 = smov 64   ;;  %v216_v33 = vld [vmem:[#allocation5 + $0x8] sm:$0xff]  ;;  %s2990_s18 = smov [#allocation14]  }
  0x38   :  { %2456 = vmatpush3.msra.mxu0 %v3081_v2  ;;  %2467 = vmatpush3.msra.mxu1 %v3081_v2  ;;  %vm202_vm1 = vcmp.gt.s32.totalorder %v3119_v6, 0  ;;  %v101_v9 = vld [vmem:[#allocation5] sm:$0xff]  ;;  %vm315_vm7 = vcmp.gt.s32.totalorder %v3119_v6, 1  ;;  %vm433_vm9 = vcmp.gt.s32.totalorder %v3119_v6, 2  ;;  %vm551_vm11 = vcmp.gt.s32.totalorder %v3119_v6, 3  ;;  %s2281_s19 = sshll.u32 %s2990_s18, 4  ;;  %s2282_s19 = int_to_ptr.vmem [resolvable:$true] %s2281_s19 }
  0x39   :  { %2457 = vmatprep.subr.mxu0 %v2984_v1  ;;  %2468 = vmatprep.subr.mxu1 %v2984_v1  ;;  %v203_v8 = vsel %vm202_vm1, 1, %v2986_v7  ;;  %vm94_vm2 = vcmp.ge.s32.totalorder %v93_v17, 64  ;;  %vm95_vm3 = vcmp.lt.s32.totalorder %v93_v17, 96  ;;  %v316_v43 = vsel %vm315_vm7, 1, %v2986_v7  ;;  %s2908_s21 = scalar_lea.vmem %s2282_s19, 256  ;;  %p2913_p7 = scmp.lt.s32.totalorder %s2282_s19, %s2282_s19 }
  0x3a   :  { %2458 = vmatpush3.msra.mxu0 %v3083_v3  ;;  %2469 = vmatpush3.msra.mxu1 %v3083_v3  ;;  %vm3125_vm4 = vmand %vm94_vm2, %vm95_vm3  ;;  %vm669_vm13 = vcmp.gt.s32.totalorder %v3119_v6, 4  ;;  %vm787_vm15 = vcmp.gt.s32.totalorder %v3119_v6, 5  ;;  %vm905_vm2 = vcmp.gt.s32.totalorder %v3119_v6, 6  ;;  %vm1023_vm7 = vcmp.gt.s32.totalorder %v3119_v6, 7  ;;  %p2909_p6 = scmp.ne.s32.totalorder %s2282_s19, %s2908_s21  ;;  %p2914_p8 = scmp.lt.s32.totalorder %s2908_s21, %s2908_s21 }
  0x3b   :  { %2459 = vmatprep.subr.mxu0 %v2984_v1  ;;  %2470 = vmatprep.subr.mxu1 %v2984_v1 }
  0x3c   :  { %2460 = vmatpush3.msra.mxu0 %v3088_v4  ;;  %2471 = vmatpush3.msra.mxu1 %v3088_v4  ;;  %p2915_p9 = por %p2914_p8, %p2913_p7 }
  0x3d   :  { %2461 = vmatprep.subr.mxu0 %v2984_v1  ;;  %2472 = vmatprep.subr.mxu1 %v2984_v1 }
  0x3e   :  { %2462 = vmatpush3.msra.mxu0 %v3094_v5  ;;  %2473 = vmatpush3.msra.mxu1 %v3094_v5  ;;  %p2916_p10 = pnand %p2915_p9, %p2909_p6 }
  0x3f   :  { %2464 = vmatmul.mubr.f32.vlgmr.msra.gmra.mxu0 %v2984_v1  ;;  %2477 = vmatprep.subr.mxu0 %v2984_v1 }
  0x40   :  { %2478 = vmatpush3.msra.mxu0 %v3081_v2  ;;  %2485 = vmatprep.mubr.msk.f32.mxu0 %vm2985_vm0, %v2984_v1 }
  0x41   :  { %2479 = vmatprep.subr.mxu0 %v2984_v1  ;;  %2488 = vmatprep.subr.mxu1 %v2984_v1 }
  0x42   :  { %2480 = vmatpush3.msra.mxu0 %v3083_v3  ;;  %2666 = vset.pattern.permute.xlu1 %v2986_v7 }
  0x43   :  { %2481 = vmatprep.subr.mxu0 %v2984_v1  ;;  %2667 = vset.pattern.permute.xlu0 %v2986_v7 }
  0x44   :  { %2482 = vmatpush3.msra.mxu0 %v3088_v4  ;;  %205 = vperm.xlu1 %2666, %v203_v8  }
  0x45   :  { %2483 = vmatprep.subr.mxu0 %v2984_v1 }
  0x46   :  { %2484 = vmatpush3.msra.mxu0 %v3094_v5 }
  0x47   :  { %2499 = vmatprep.subr.mxu0 %v2984_v1 }
  0xbf   :  { %v3134_v28 = vpop.permute.xlu1 %205 }
  0xc0   :  { %vm207_vm5 = vcmp.eq.s32.totalorder %v3134_v28, 1 }
  0xff   :  { %v172_v10 = vpop.f32.mrf.mxu0 }
 0x100   :  { %v176_v11 = vadd.f32 %v172_v10, %v101_v9  ;;  %v434_v9 = vsel %vm433_vm9, 1, %v2986_v7 }
 0x101   :  { %v2465_v12 = vpop.f32.mrf.mxu0 }
 0x102   :  { %v2314_v13 = vmul.f32 -1.442695, %v176_v11 }
 0x104   :  { %2668 = vpow2.f32 %v2314_v13 }
 0x105   :  { %2670 = vtanh.f32 %v176_v11 }
 0x111   :  { %v2669_v14 = vpop.eup %2668 }
 0x112   :  { %v181_v15 = vadd.f32 1.0, %v2669_v14  ;;  %v2671_v19 = vpop.eup %2670 }
 0x114   :  { %2672 = vrcp.f32 %v181_v15 }
 0x121   :  { %v2673_v20 = vpop.eup %2672 }
 0x122   :  { %v184_v21 = vsel %vm3125_vm4, %v2671_v19, %v2673_v20 }
 0x123   :  { %187 = vrot.lane.b32.xlu0 %v184_v21, %s2987_s0  ;;  %v185_v24 = vmul.f32 0.0, %v184_v21 }
 0x195   :  { %v188_v22 = vpop.permute.xlu0 %187 }
 0x196   :  { %v190_v23 = vmul.f32 %v188_v22, %v184_v21 }
 0x198   :  { %192 = vrot.lane.b32.xlu0 %v190_v23, %s2988_s14  ;;  %v449_v23 = vld [vmem:[#allocation5 + $0x18] sm:$0xff] }
 0x20a   :  { %v193_v25 = vpop.permute.xlu0 %192 }
 0x20b   :  { %v195_v26 = vadd.f32 %v193_v25, %v185_v24 }
 0x20d   :  { %2674 = vtanh.f32 %v195_v26  ;;  %v214_v46 = vsel %vm207_vm5, %v195_v26, 0.0 }
 0x21a   :  { %v2675_v27 = vpop.eup %2674 }
 0x21b   :  { %198 = vrot.lane.b32.xlu1 %v2675_v27, %s2987_s0 }
 0x28d   :  { %v199_v29 = vpop.permute.xlu1 %198 }
 0x28e   :  { %v201_v30 = vmul.f32 %v199_v29, %v184_v21 }
 0x290   :  { %v208_v31 = vsel %vm207_vm5, %v201_v30, 0.0 }
 0x291   :  { %210 = vrot.lane.b32.xlu0 %v208_v31, %s2988_s14 }
 0x303   :  { %v211_v32 = vpop.permute.xlu0 %210 }
 0x304   :  { %213 = vst.msk [vmem:[#allocation2] sm:$0xff] %vm102_vm6, %v211_v32  ;;  %2475 = vmatmul.mubr.msk.f32.vlgmr.msra.gmra.mxu1 %vm102_vm6, %v211_v32 }
 0x305   :  { %2489 = vmatpush3.msra.mxu1 %v3081_v2  ;;  %2496 = vmatprep.mubr.msk.f32.mxu1 %vm2985_vm0, %v2984_v1 }
 0x306   :  { %2490 = vmatprep.subr.mxu1 %v2984_v1 }
 0x307   :  { %2491 = vmatpush3.msra.mxu1 %v3083_v3 }
 0x308   :  { %2492 = vmatprep.subr.mxu1 %v2984_v1 }
 0x309   :  { %2493 = vmatpush3.msra.mxu1 %v3088_v4 }
 0x30a   :  { %2494 = vmatprep.subr.mxu1 %v2984_v1 }
 0x30b   :  { %2495 = vmatpush3.msra.mxu1 %v3094_v5 }
 0x30c   :  { %2510 = vmatprep.subr.mxu1 %v2984_v1 }
 0x3c4   :  { %v285_v34 = vpop.f32.mrf.mxu1 }
 0x3c5   :  { %v289_v35 = vadd.f32 %v285_v34, %v216_v33  ;;  %v552_v34 = vsel %vm551_vm11, 1, %v2986_v7 }
 0x3c6   :  { %v2476_v36 = vpop.f32.mrf.mxu1 }
 0x3c7   :  { %v2316_v37 = vmul.f32 -1.442695, %v289_v35 }
 0x3c9   :  { %2676 = vpow2.f32 %v2316_v37 }
 0x3ca   :  { %2678 = vtanh.f32 %v289_v35 }
 0x3d6   :  { %v2677_v38 = vpop.eup %2676 }
 0x3d7   :  { %v294_v39 = vadd.f32 1.0, %v2677_v38  ;;  %v2679_v40 = vpop.eup %2678 }
 0x3d9   :  { %2680 = vrcp.f32 %v294_v39 }
 0x3e6   :  { %v2681_v41 = vpop.eup %2680 }
 0x3e7   :  { %v297_v42 = vsel %vm3125_vm4, %v2679_v40, %v2681_v41 }
 0x3e8   :  { %300 = vrot.lane.b32.xlu1 %v297_v42, %s2987_s0  ;;  %v298_v47 = vmul.f32 %v297_v42, %v214_v46 }
 0x3ec   :  { %318 = vperm.xlu1 %2666, %v316_v43  }
 0x45a   :  { %v301_v44 = vpop.permute.xlu1 %300 }
 0x45b   :  { %v303_v45 = vmul.f32 %v301_v44, %v297_v42 }
 0x45d   :  { %305 = vrot.lane.b32.xlu0 %v303_v45, %s2988_s14 }
 0x467   :  { %v3161_v51 = vpop.permute.xlu1 %318 }
 0x468   :  { %vm320_vm8 = vcmp.eq.s32.totalorder %v3161_v51, 1 }
 0x4cf   :  { %v306_v48 = vpop.permute.xlu0 %305 }
 0x4d0   :  { %v308_v49 = vadd.f32 %v306_v48, %v298_v47  ;;  %v567_v47 = vld [vmem:[#allocation5 + $0x20] sm:$0xff] }
 0x4d2   :  { %2682 = vtanh.f32 %v308_v49  ;;  %v329_v12 = vsel %vm320_vm8, %v308_v49, %v214_v46 }
 0x4df   :  { %v2683_v50 = vpop.eup %2682 }
 0x4e0   :  { %311 = vrot.lane.b32.xlu0 %v2683_v50, %s2987_s0 }
 0x552   :  { %v312_v52 = vpop.permute.xlu0 %311 }
 0x553   :  { %v3163_v53 = vmul.f32 %v312_v52, %v297_v42 }
 0x555   :  { %v328_v54 = vsel %vm320_vm8, %v3163_v53, %v208_v31 }
 0x556   :  { %333 = vrot.lane.b32.xlu1 %v328_v54, %s2988_s14 }
 0x5c8   :  { %v334_v55 = vpop.permute.xlu1 %333 }
 0x5c9   :  { %2486 = vmatmul.mubr.msk.f32.vlgmr.msra.gmra.mxu0 %vm102_vm6, %v334_v55 }
 0x5ca   :  { %2500 = vmatpush3.msra.mxu0 %v3081_v2  ;;  %2507 = vmatprep.mubr.msk.f32.mxu0 %vm2985_vm0, %v2984_v1 }
 0x5cb   :  { %2501 = vmatprep.subr.mxu0 %v2984_v1 }
 0x5cc   :  { %2502 = vmatpush3.msra.mxu0 %v3083_v3 }
 0x5cd   :  { %2503 = vmatprep.subr.mxu0 %v2984_v1 }
 0x5ce   :  { %2504 = vmatpush3.msra.mxu0 %v3088_v4 }
 0x5cf   :  { %2505 = vmatprep.subr.mxu0 %v2984_v1 }
 0x5d0   :  { %2506 = vmatpush3.msra.mxu0 %v3094_v5 }
 0x5d1   :  { %2521 = vmatprep.subr.mxu0 %v2984_v1 }
 0x689   :  { %v403_v57 = vpop.f32.mrf.mxu0 }
 0x68a   :  { %v407_v58 = vadd.f32 %v403_v57, %v331_v56 }
 0x68b   :  { %v2487_v59 = vpop.f32.mrf.mxu0 }
 0x68c   :  { %v2318_v60 = vmul.f32 -1.442695, %v407_v58  ;;  %v670_v59 = vsel %vm669_vm13, 1, %v2986_v7 }
 0x68e   :  { %2684 = vpow2.f32 %v2318_v60 }
 0x68f   :  { %2686 = vtanh.f32 %v407_v58 }
 0x69b   :  { %v2685_v61 = vpop.eup %2684 }
 0x69c   :  { %v412_v62 = vadd.f32 1.0, %v2685_v61  ;;  %v2687_v63 = vpop.eup %2686 }
 0x69e   :  { %2688 = vrcp.f32 %v412_v62 }
 0x6ab   :  { %v2689_v0 = vpop.eup %2688 }
 0x6ac   :  { %v415_v8 = vsel %vm3125_vm4, %v2687_v63, %v2689_v0 }
 0x6ad   :  { %418 = vrot.lane.b32.xlu0 %v415_v8, %s2987_s0  ;;  %v416_v13 = vmul.f32 %v415_v8, %v329_v12 }
 0x6b1   :  { %436 = vperm.xlu0 %2667, %v434_v9  }
 0x71f   :  { %v419_v10 = vpop.permute.xlu0 %418 }
 0x720   :  { %v421_v11 = vmul.f32 %v419_v10, %v415_v8 }
 0x722   :  { %423 = vrot.lane.b32.xlu1 %v421_v11, %s2988_s14 }
 0x72c   :  { %v3190_v17 = vpop.permute.xlu0 %436 }
 0x72d   :  { %vm438_vm10 = vcmp.eq.s32.totalorder %v3190_v17, 1  ;;  %v3652_v17 = vld [vmem:[%s3770_s6] ss:$0 sm:$0xff]  ;;  %s2989_s6 = smov 96  }
 0x794   :  { %v424_v14 = vpop.permute.xlu1 %423 }
 0x795   :  { %v426_v15 = vadd.f32 %v424_v14, %v416_v13 }
 0x797   :  { %2690 = vtanh.f32 %v426_v15  ;;  %v447_v37 = vsel %vm438_vm10, %v426_v15, %v329_v12  ;;  %v685_v15 = vld [vmem:[#allocation5 + $0x28] sm:$0xff] }
 0x7a4   :  { %v2691_v16 = vpop.eup %2690 }
 0x7a5   :  { %429 = vrot.lane.b32.xlu1 %v2691_v16, %s2987_s0 }
 0x817   :  { %v430_v19 = vpop.permute.xlu1 %429 }
 0x818   :  { %v3192_v20 = vmul.f32 %v430_v19, %v415_v8 }
 0x81a   :  { %v446_v21 = vsel %vm438_vm10, %v3192_v20, %v328_v54 }
 0x81b   :  { %451 = vrot.lane.b32.xlu1 %v446_v21, %s2988_s14 }
 0x88d   :  { %v452_v22 = vpop.permute.xlu1 %451 }
 0x88e   :  { %2497 = vmatmul.mubr.msk.f32.vlgmr.msra.gmra.mxu1 %vm102_vm6, %v452_v22 }
 0x88f   :  { %2511 = vmatpush3.msra.mxu1 %v3081_v2  ;;  %2518 = vmatprep.mubr.msk.f32.mxu1 %vm2985_vm0, %v2984_v1 }
 0x890   :  { %2512 = vmatprep.subr.mxu1 %v2984_v1 }
 0x891   :  { %2513 = vmatpush3.msra.mxu1 %v3083_v3 }
 0x892   :  { %2514 = vmatprep.subr.mxu1 %v2984_v1 }
 0x893   :  { %2515 = vmatpush3.msra.mxu1 %v3088_v4 }
 0x894   :  { %2516 = vmatprep.subr.mxu1 %v2984_v1 }
 0x895   :  { %2517 = vmatpush3.msra.mxu1 %v3094_v5 }
 0x896   :  { %2532 = vmatprep.subr.mxu1 %v2984_v1 }
 0x94e   :  { %v521_v24 = vpop.f32.mrf.mxu1 }
 0x94f   :  { %v525_v25 = vadd.f32 %v521_v24, %v449_v23 }
 0x950   :  { %v2498_v26 = vpop.f32.mrf.mxu1 }
 0x951   :  { %v2320_v27 = vmul.f32 -1.442695, %v525_v25 }
 0x953   :  { %2692 = vpow2.f32 %v2320_v27 }
 0x954   :  { %2694 = vtanh.f32 %v525_v25 }
 0x960   :  { %v2693_v29 = vpop.eup %2692 }
 0x961   :  { %v530_v30 = vadd.f32 1.0, %v2693_v29  ;;  %v2695_v31 = vpop.eup %2694 }
 0x963   :  { %2696 = vrcp.f32 %v530_v30 }
 0x970   :  { %v2697_v32 = vpop.eup %2696 }
 0x971   :  { %v533_v33 = vsel %vm3125_vm4, %v2695_v31, %v2697_v32 }
 0x972   :  { %536 = vrot.lane.b32.xlu0 %v533_v33, %s2987_s0  ;;  %v534_v38 = vmul.f32 %v533_v33, %v447_v37 }
 0x976   :  { %554 = vperm.xlu0 %2667, %v552_v34  }
 0x9e4   :  { %v537_v35 = vpop.permute.xlu0 %536 }
 0x9e5   :  { %v539_v36 = vmul.f32 %v537_v35, %v533_v33 }
 0x9e7   :  { %541 = vrot.lane.b32.xlu1 %v539_v36, %s2988_s14 }
 0x9f1   :  { %v3219_v42 = vpop.permute.xlu0 %554 }
 0x9f2   :  { %vm556_vm12 = vcmp.eq.s32.totalorder %v3219_v42, 1 }
 0xa59   :  { %v542_v39 = vpop.permute.xlu1 %541 }
 0xa5a   :  { %v544_v40 = vadd.f32 %v542_v39, %v534_v38  ;;  %v1048_v38 = vld [vmem:[#allocation2] sm:$0xff]  ;;  %v803_v39 = vld [vmem:[#allocation5 + $0x30] sm:$0xff] }
 0xa5c   :  { %2698 = vtanh.f32 %v544_v40  ;;  %v565_v62 = vsel %vm556_vm12, %v544_v40, %v447_v37 }
 0xa69   :  { %v2699_v41 = vpop.eup %2698 }
 0xa6a   :  { %547 = vrot.lane.b32.xlu1 %v2699_v41, %s2987_s0 }
 0xadc   :  { %v548_v43 = vpop.permute.xlu1 %547 }
 0xadd   :  { %v3221_v44 = vmul.f32 %v548_v43, %v533_v33 }
 0xadf   :  { %v564_v45 = vsel %vm556_vm12, %v3221_v44, %v446_v21  ;;  %v557_v28 = vsel %vm556_vm12, %v3221_v44, 0.0 }
 0xae0   :  { %569 = vrot.lane.b32.xlu0 %v564_v45, %s2988_s14 }
 0xb52   :  { %v570_v46 = vpop.permute.xlu0 %569 }
 0xb53   :  { %2508 = vmatmul.mubr.msk.f32.vlgmr.msra.gmra.mxu0 %vm102_vm6, %v570_v46 }
 0xb54   :  { %2522 = vmatpush3.msra.mxu0 %v3081_v2  ;;  %2529 = vmatprep.mubr.msk.f32.mxu0 %vm2985_vm0, %v2984_v1 }
 0xb55   :  { %2523 = vmatprep.subr.mxu0 %v2984_v1 }
 0xb56   :  { %2524 = vmatpush3.msra.mxu0 %v3083_v3 }
 0xb57   :  { %2525 = vmatprep.subr.mxu0 %v2984_v1 }
 0xb58   :  { %2526 = vmatpush3.msra.mxu0 %v3088_v4 }
 0xb59   :  { %2527 = vmatprep.subr.mxu0 %v2984_v1 }
 0xb5a   :  { %2528 = vmatpush3.msra.mxu0 %v3094_v5 }
 0xc13   :  { %v639_v48 = vpop.f32.mrf.mxu0 }
 0xc14   :  { %v643_v49 = vadd.f32 %v639_v48, %v567_v47 }
 0xc15   :  { %v2509_v50 = vpop.f32.mrf.mxu0 }
 0xc16   :  { %v2322_v52 = vmul.f32 -1.442695, %v643_v49 }
 0xc18   :  { %2700 = vpow2.f32 %v2322_v52  ;;  %v906_v52 = vsel %vm905_vm2, 1, %v2986_v7 }
 0xc19   :  { %2702 = vtanh.f32 %v643_v49 }
 0xc25   :  { %v2701_v54 = vpop.eup %2700 }
 0xc26   :  { %v648_v55 = vadd.f32 1.0, %v2701_v54  ;;  %v2703_v56 = vpop.eup %2702  ;;  %v1059_v54 = vld [vmem:[#allocation10 + $0x18] sm:$0xff] }
 0xc27   :  { %2543 = vmatprep.subr.mxu0 %v1059_v54 }
 0xc28   :  { %2704 = vrcp.f32 %v648_v55  ;;  %v1058_v55 = vld [vmem:[#allocation10 + $0x10] sm:$0xff] }
 0xc35   :  { %v2705_v57 = vpop.eup %2704 }
 0xc36   :  { %v651_v58 = vsel %vm3125_vm4, %v2703_v56, %v2705_v57  ;;  %v1057_v56 = vld [vmem:[#allocation10 + $0x8] sm:$0xff]  ;;  %v321_v57 = vsel %vm320_vm8, %v3163_v53, 0.0 }
 0xc37   :  { %654 = vrot.lane.b32.xlu1 %v651_v58, %s2987_s0  ;;  %v652_v63 = vmul.f32 %v651_v58, %v565_v62 }
 0xc3b   :  { %672 = vperm.xlu1 %2666, %v670_v59  }
 0xca9   :  { %v655_v60 = vpop.permute.xlu1 %654 }
 0xcaa   :  { %v657_v61 = vmul.f32 %v655_v60, %v651_v58 }
 0xcac   :  { %659 = vrot.lane.b32.xlu0 %v657_v61, %s2988_s14 }
 0xcb6   :  { %v3247_v10 = vpop.permute.xlu1 %672 }
 0xcb7   :  { %vm674_vm14 = vcmp.eq.s32.totalorder %v3247_v10, 1 }
 0xd1e   :  { %v660_v0 = vpop.permute.xlu0 %659 }
 0xd1f   :  { %v662_v8 = vadd.f32 %v660_v0, %v652_v63 }
 0xd21   :  { %2706 = vtanh.f32 %v662_v8  ;;  %v683_v27 = vsel %vm674_vm14, %v662_v8, %v565_v62 }
 0xd2e   :  { %v2707_v9 = vpop.eup %2706 }
 0xd2f   :  { %665 = vrot.lane.b32.xlu0 %v2707_v9, %s2987_s0 }
 0xda1   :  { %v666_v11 = vpop.permute.xlu0 %665 }
 0xda2   :  { %v3249_v12 = vmul.f32 %v666_v11, %v651_v58  ;;  %v1056_v58 = vld [vmem:[#allocation10] sm:$0xff] }
 0xda4   :  { %v682_v13 = vsel %vm674_vm14, %v3249_v12, %v564_v45 }
 0xda5   :  { %687 = vrot.lane.b32.xlu1 %v682_v13, %s2988_s14 }
 0xe17   :  { %v688_v14 = vpop.permute.xlu1 %687 }
 0xe18   :  { %2519 = vmatmul.mubr.msk.f32.vlgmr.msra.gmra.mxu1 %vm102_vm6, %v688_v14  ;;  %v3318_v14 = vld [vmem:[#allocation11 + $0x10] sm:$0xff] }
 0xe19   :  { %2533 = vmatpush3.msra.mxu1 %v3081_v2  ;;  %2540 = vmatprep.mubr.msk.f32.mxu1 %vm2985_vm0, %v2984_v1 }
 0xe1a   :  { %2534 = vmatprep.subr.mxu1 %v2984_v1 }
 0xe1b   :  { %2535 = vmatpush3.msra.mxu1 %v3083_v3 }
 0xe1c   :  { %2536 = vmatprep.subr.mxu1 %v2984_v1 }
 0xe1d   :  { %2537 = vmatpush3.msra.mxu1 %v3088_v4 }
 0xe1e   :  { %2538 = vmatprep.subr.mxu1 %v2984_v1 }
 0xe1f   :  { %2539 = vmatpush3.msra.mxu1 %v3094_v5  ;;  %v788_v5 = vsel %vm787_vm15, 1, %v2986_v7 }
 0xe20   :  { %2563 = vmatprep.subr.mxu1 %v2984_v1 }
 0xed8   :  { %v757_v16 = vpop.f32.mrf.mxu1 }
 0xed9   :  { %v761_v2 = vadd.f32 %v757_v16, %v685_v15  ;;  %v3321_v15 = vld [vmem:[#allocation11 + $0x8] sm:$0xff]  ;;  %v3325_v16 = vld [vmem:[#allocation11] sm:$0xff] }
 0xeda   :  { %v2520_v19 = vpop.f32.mrf.mxu1 }
 0xedb   :  { %v2324_v21 = vmul.f32 -1.442695, %v761_v2 }
 0xedd   :  { %2708 = vpow2.f32 %v2324_v21 }
 0xede   :  { %2710 = vtanh.f32 %v761_v2 }
 0xeea   :  { %v2709_v22 = vpop.eup %2708 }
 0xeeb   :  { %v766_v23 = vadd.f32 1.0, %v2709_v22  ;;  %v2711_v3 = vpop.eup %2710 }
 0xeed   :  { %2712 = vrcp.f32 %v766_v23 }
 0xefa   :  { %v2713_v24 = vpop.eup %2712 }
 0xefb   :  { %v769_v4 = vsel %vm3125_vm4, %v2711_v3, %v2713_v24 }
 0xefc   :  { %772 = vrot.lane.b32.xlu0 %v769_v4, %s2987_s0  ;;  %v770_v29 = vmul.f32 %v769_v4, %v683_v27 }
 0xf00   :  { %790 = vperm.xlu0 %2667, %v788_v5   ;;  %v3366_v5 = vld [vmem:[%s3768_s4] ss:$0 sm:$0xff] }
 0xf6e   :  { %v773_v25 = vpop.permute.xlu0 %772 }
 0xf6f   :  { %v775_v26 = vmul.f32 %v773_v25, %v769_v4 }
 0xf71   :  { %777 = vrot.lane.b32.xlu1 %v775_v26, %s2988_s14 }
 0xf7b   :  { %v3276_v33 = vpop.permute.xlu0 %790 }
 0xf7c   :  { %vm792_vm1 = vcmp.eq.s32.totalorder %v3276_v33, 1 }
 0xfe3   :  { %v778_v30 = vpop.permute.xlu1 %777 }
 0xfe4   :  { %v780_v31 = vadd.f32 %v778_v30, %v770_v29 }
 0xfe6   :  { %2714 = vtanh.f32 %v780_v31  ;;  %v3307_v63 = vsel %vm792_vm1, %v780_v31, %v683_v27 }
 0xff3   :  { %v2715_v32 = vpop.eup %2714 }
 0xff4   :  { %783 = vrot.lane.b32.xlu1 %v2715_v32, %s2987_s0 }
0x1066   :  { %v784_v34 = vpop.permute.xlu1 %783 }
0x1067   :  { %v3278_v35 = vmul.f32 %v784_v34, %v769_v4 }
0x1069   :  { %v3284_v36 = vsel %vm792_vm1, %v3278_v35, %v682_v13  ;;  %v3314_v13 = vld [vmem:[#allocation11 + $0x18] sm:$0xff] }
0x106a   :  { %805 = vrot.lane.b32.xlu0 %v3284_v36, %s2988_s14 }
0x10dc   :  { %v806_v37 = vpop.permute.xlu0 %805 }
0x10dd   :  { %2530 = vmatmul.mubr.msk.f32.vlgmr.msra.gmra.mxu0 %vm102_vm6, %v806_v37 }
0x10de   :  { %2551 = vmatprep.mubr.msk.f32.mxu0 %vm102_vm6, %v1048_v38  ;;  %2544 = vmatpush3.msra.mxu0 %v1059_v54 }
0x10df   :  { %2545 = vmatprep.subr.mxu0 %v1058_v55 }
0x10e0   :  { %2546 = vmatpush3.msra.mxu0 %v1058_v55 }
0x10e1   :  { %2547 = vmatprep.subr.mxu0 %v1057_v56 }
0x10e2   :  { %2548 = vmatpush3.msra.mxu0 %v1057_v56 }
0x10e3   :  { %2549 = vmatprep.subr.mxu0 %v1056_v58 }
0x10e4   :  { %2550 = vmatpush3.msra.mxu0 %v1056_v58 }
0x10e5   :  { %2585 = vmatprep.subr.mxu0 %v2984_v1 }
0x119d   :  { %v875_v40 = vpop.f32.mrf.mxu0 }
0x119e   :  { %v879_v41 = vadd.f32 %v875_v40, %v803_v39  ;;  %v921_v40 = vld [vmem:[#allocation5 + $0x38] sm:$0xff] }
0x119f   :  { %v2531_v43 = vpop.f32.mrf.mxu0 }
0x11a0   :  { %v2326_v45 = vmul.f32 -1.442695, %v879_v41 }
0x11a2   :  { %2716 = vpow2.f32 %v2326_v45 }
0x11a3   :  { %2718 = vtanh.f32 %v879_v41 }
0x11af   :  { %v2717_v46 = vpop.eup %2716 }
0x11b0   :  { %v884_v47 = vadd.f32 1.0, %v2717_v46  ;;  %v2719_v48 = vpop.eup %2718 }
0x11b2   :  { %2720 = vrcp.f32 %v884_v47 }
0x11bf   :  { %v2721_v49 = vpop.eup %2720 }
0x11c0   :  { %v887_v50 = vsel %vm3125_vm4, %v2719_v48, %v2721_v49 }
0x11c1   :  { %890 = vrot.lane.b32.xlu1 %v887_v50, %s2987_s0  ;;  %v888_v0 = vmul.f32 %v887_v50, %v3307_v63 }
0x11c5   :  { %908 = vperm.xlu1 %2666, %v906_v52  }
0x11c9   :  { %323 = vrot.lane.b32.xlu1 %v321_v57, %s2988_s14 }
0x1233   :  { %v891_v59 = vpop.permute.xlu1 %890 }
0x1234   :  { %v893_v60 = vmul.f32 %v891_v59, %v887_v50 }
0x1236   :  { %895 = vrot.lane.b32.xlu0 %v893_v60, %s2988_s14 }
0x1240   :  { %v3301_v61 = vpop.permute.xlu1 %908 }
0x1241   :  { %vm910_vm3 = vcmp.eq.s32.totalorder %v3301_v61, 1 }
0x1244   :  { %v324_v62 = vpop.permute.xlu1 %323 }
0x1245   :  { %327 = vst.msk [vmem:[#allocation2 + $0x8] sm:$0xff] %vm102_vm6, %v324_v62  ;;  %v1024_v62 = vsel %vm1023_vm7, 1, %v2986_v7 }
0x124c   :  { %v1049_v53 = vld [vmem:[#allocation2 + $0x8] sm:$0xff] }
0x124d   :  { %2552 = vmatmul.mubr.msk.f32.vlgmr.msra.gmra.mxu0 %vm102_vm6, %v1049_v53 }
0x124e   :  { %2586 = vmatpush3.msra.mxu0 %v3314_v13 }
0x124f   :  { %2587 = vmatprep.subr.mxu0 %v2984_v1 }
0x1250   :  { %2588 = vmatpush3.msra.mxu0 %v3318_v14 }
0x1251   :  { %2589 = vmatprep.subr.mxu0 %v2984_v1 }
0x1252   :  { %2590 = vmatpush3.msra.mxu0 %v3321_v15 }
0x1253   :  { %2591 = vmatprep.subr.mxu0 %v2984_v1 }
0x1254   :  { %2592 = vmatpush3.msra.mxu0 %v3325_v16 }
0x1255   :  { %2607 = vmatprep.subr.mxu0 %v2984_v1 }
0x12a8   :  { %v896_v8 = vpop.permute.xlu0 %895 }
0x12a9   :  { %v3310_v9 = vadd.f32 %v896_v8, %v888_v0 }
0x12ab   :  { %2722 = vtanh.f32 %v3310_v9 }
0x12b8   :  { %v2723_v11 = vpop.eup %2722 }
0x12b9   :  { %901 = vrot.lane.b32.xlu0 %v2723_v11, %s2987_s0 }
0x130d   :  { %v2553_v23 = vpop.f32.mrf.mxu0 }
0x130e   :  { %v1163_v6 = vadd.f32 %v2553_v23, %v3366_v5  ;;  %v3410_v23 = vsel %vm910_vm3, %v3310_v9, %v3307_v63  ;;  %v439_v63 = vsel %vm438_vm10, %v3192_v20, 0.0  ;;  %v675_v9 = vsel %vm674_vm14, %v3249_v12, 0.0 }
0x130f   :  { %v1157_v4 = vpop.f32.mrf.mxu0 }
0x1310   :  { %v1158_v25 = vadd.f32 %v3366_v5, %v1157_v4 }
0x132b   :  { %v902_v2 = vpop.permute.xlu0 %901 }
0x132c   :  { %v3330_v19 = vmul.f32 %v902_v2, %v887_v50 }
0x132e   :  { %v3337_v21 = vsel %vm910_vm3, %v3330_v19, %v3284_v36 }
0x132f   :  { %923 = vrot.lane.b32.xlu0 %v3337_v21, %s2988_s14 }
0x13a1   :  { %v924_v22 = vpop.permute.xlu0 %923 }
0x13a2   :  { %2541 = vmatmul.mubr.msk.f32.vlgmr.msra.gmra.mxu1 %vm102_vm6, %v924_v22 }
0x13a3   :  { %2564 = vmatpush3.msra.mxu1 %v3314_v13  ;;  %2571 = vmatprep.mubr.msk.f32.mxu1 %vm2985_vm0, %v2984_v1 }
0x13a4   :  { %2565 = vmatprep.subr.mxu1 %v2984_v1 }
0x13a5   :  { %2566 = vmatpush3.msra.mxu1 %v3318_v14 }
0x13a6   :  { %2567 = vmatprep.subr.mxu1 %v2984_v1 }
0x13a7   :  { %2568 = vmatpush3.msra.mxu1 %v3321_v15 }
0x13a8   :  { %2569 = vmatprep.subr.mxu1 %v2984_v1 }
0x13a9   :  { %2570 = vmatpush3.msra.mxu1 %v3325_v16 }
0x13aa   :  { %2572 = vmatmul.mubr.f32.vlgmr.msra.gmra.mxu1 %v2984_v1  ;;  %2574 = vmatprep.subr.mxu1 %v2984_v1 }
0x13ab   :  { %2575 = vmatpush3.msra.mxu1 %v3314_v13  ;;  %2582 = vmatprep.mubr.msk.f32.mxu1 %vm2985_vm0, %v2984_v1 }
0x13ac   :  { %2576 = vmatprep.subr.mxu1 %v2984_v1 }
0x13ad   :  { %2577 = vmatpush3.msra.mxu1 %v3318_v14 }
0x13ae   :  { %2578 = vmatprep.subr.mxu1 %v2984_v1 }
0x13af   :  { %2579 = vmatpush3.msra.mxu1 %v3321_v15 }
0x13b0   :  { %2580 = vmatprep.subr.mxu1 %v2984_v1 }
0x13b1   :  { %2581 = vmatpush3.msra.mxu1 %v3325_v16 }
0x13b2   :  { %2596 = vmatprep.subr.mxu1 %v2984_v1 }
0x1462   :  { %v993_v3 = vpop.f32.mrf.mxu1 }
0x1463   :  { %v997_v41 = vadd.f32 %v993_v3, %v921_v40 }
0x1464   :  { %v2542_v24 = vpop.f32.mrf.mxu1 }
0x1465   :  { %v2328_v43 = vmul.f32 -1.442695, %v997_v41 }
0x146a   :  { %v1275_v26 = vpop.f32.mrf.mxu1 }
0x146b   :  { %v1279_v27 = vadd.f32 %v1275_v26, %v1158_v25 }
0x146c   :  { %v2573_v29 = vpop.f32.mrf.mxu1 }
0x146d   :  { %v2338_v30 = vmul.f32 -1.442695, %v1279_v27 }
0x146f   :  { %2724 = vpow2.f32 %v2338_v30 }
0x1470   :  { %2726 = vtanh.f32 %v1279_v27 }
0x147c   :  { %v2725_v31 = vpop.eup %2724 }
0x147d   :  { %v1284_v32 = vadd.f32 1.0, %v2725_v31  ;;  %v2727_v34 = vpop.eup %2726 }
0x147f   :  { %2728 = vrcp.f32 %v1284_v32  ;;  %v911_v32 = vsel %vm910_vm3, %v3330_v19, 0.0 }
0x1480   :  { %2730 = vpow2.f32 %v2328_v43 }
0x148c   :  { %v2729_v36 = vpop.eup %2728 }
0x148d   :  { %v1287_v37 = vsel %vm3125_vm4, %v2727_v34, %v2729_v36  ;;  %v2731_v45 = vpop.eup %2730 }
0x148e   :  { %1290 = vrot.lane.b32.xlu1 %v1287_v37, %s2987_s0  ;;  %v1288_v46 = vmul.f32 0.0, %v1287_v37  ;;  %v1002_v47 = vadd.f32 1.0, %v2731_v45 }
0x1500   :  { %v1291_v38 = vpop.permute.xlu1 %1290 }
0x1501   :  { %v1293_v39 = vmul.f32 %v1291_v38, %v1287_v37 }
0x1503   :  { %1295 = vrot.lane.b32.xlu0 %v1293_v39, %s2988_s14 }
0x1575   :  { %v1296_v48 = vpop.permute.xlu0 %1295 }
0x1576   :  { %v1298_v49 = vadd.f32 %v1296_v48, %v1288_v46  ;;  %v793_v46 = vsel %vm792_vm1, %v3278_v35, 0.0 }
0x1578   :  { %2732 = vtanh.f32 %v1298_v49  ;;  %v3433_v34 = vsel %vm207_vm5, %v1298_v49, 0.0 }
0x1579   :  { %2734 = vrcp.f32 %v1002_v47 }
0x157a   :  { %2736 = vtanh.f32 %v997_v41 }
0x1585   :  { %v2733_v50 = vpop.eup %2732 }
0x1586   :  { %v2735_v52 = vpop.eup %2734  ;;  %1301 = vrot.lane.b32.xlu1 %v2733_v50, %s2987_s0 }
0x1587   :  { %v2737_v54 = vpop.eup %2736 }
0x1588   :  { %v3376_v55 = vsel %vm3125_vm4, %v2737_v54, %v2735_v52 }
0x1589   :  { %v1006_v26 = vmul.f32 %v3376_v55, %v3410_v23 }
0x158a   :  { %1008 = vrot.lane.b32.xlu1 %v3376_v55, %s2987_s0 }
0x15f8   :  { %v1302_v56 = vpop.permute.xlu1 %1301 }
0x15f9   :  { %v1304_v57 = vmul.f32 %v1302_v56, %v1287_v37 }
0x15fb   :  { %v3382_v58 = vsel %vm207_vm5, %v1304_v57, 0.0 }
0x15fc   :  { %1307 = vrot.lane.b32.xlu0 %v3382_v58, %s2988_s14  ;;  %v1009_v59 = vpop.permute.xlu1 %1008 }
0x15fd   :  { %v1011_v60 = vmul.f32 %v1009_v59, %v3376_v55 }
0x15ff   :  { %1013 = vrot.lane.b32.xlu1 %v1011_v60, %s2988_s14 }
0x1603   :  { %1026 = vperm.xlu1 %2666, %v1024_v62  }
0x166e   :  { %v1308_v53 = vpop.permute.xlu0 %1307 }
0x166f   :  { %1310 = vst.msk [vmem:[#allocation2] sm:$0xff] %vm102_vm6, %v1308_v53  ;;  %2583 = vmatmul.mubr.msk.f32.vlgmr.msra.gmra.mxu1 %vm102_vm6, %v1308_v53 }
0x1670   :  { %2597 = vmatpush3.msra.mxu1 %v3314_v13  ;;  %2604 = vmatprep.mubr.msk.f32.mxu1 %vm2985_vm0, %v2984_v1 }
0x1671   :  { %2598 = vmatprep.subr.mxu1 %v2984_v1  ;;  %v1014_v25 = vpop.permute.xlu1 %1013 }
0x1672   :  { %2599 = vmatpush3.msra.mxu1 %v3318_v14  ;;  %v3414_v27 = vadd.f32 %v1014_v25, %v1006_v26 }
0x1673   :  { %2600 = vmatprep.subr.mxu1 %v2984_v1 }
0x1674   :  { %2601 = vmatpush3.msra.mxu1 %v3321_v15 }
0x1675   :  { %2602 = vmatprep.subr.mxu1 %v2984_v1 }
0x1676   :  { %2603 = vmatpush3.msra.mxu1 %v3325_v16 }
0x1677   :  { %2618 = vmatprep.subr.mxu1 %v2984_v1 }
0x167e   :  { %v3448_v43 = vpop.permute.xlu1 %1026 }
0x167f   :  { %vm1028_vm5 = vcmp.eq.s32.totalorder %v3448_v43, 1 }
0x172f   :  { %v1382_v7 = vpop.f32.mrf.mxu1 }
0x1730   :  { %v1386_v0 = vadd.f32 %v1382_v7, %v1163_v6 }
0x1731   :  { %v2584_v8 = vpop.f32.mrf.mxu1 }
0x1732   :  { %v2340_v11 = vmul.f32 -1.442695, %v1386_v0 }
0x1734   :  { %2738 = vpow2.f32 %v2340_v11 }
0x1735   :  { %2740 = vtanh.f32 %v1386_v0 }
0x1741   :  { %v2739_v2 = vpop.eup %2738 }
0x1742   :  { %v1391_v22 = vadd.f32 1.0, %v2739_v2  ;;  %v2741_v3 = vpop.eup %2740 }
0x1744   :  { %2742 = vrcp.f32 %v1391_v22 }
0x1745   :  { %2744 = vtanh.f32 %v3414_v27 }
0x1751   :  { %v2743_v24 = vpop.eup %2742 }
0x1752   :  { %v1394_v4 = vsel %vm3125_vm4, %v2741_v3, %v2743_v24  ;;  %v2745_v31 = vpop.eup %2744 }
0x1753   :  { %1397 = vrot.lane.b32.xlu0 %v1394_v4, %s2987_s0  ;;  %v1395_v20 = vmul.f32 %v1394_v4, %v3433_v34 }
0x17c5   :  { %v1398_v29 = vpop.permute.xlu0 %1397 }
0x17c6   :  { %v1400_v30 = vmul.f32 %v1398_v29, %v1394_v4 }
0x17c8   :  { %1402 = vrot.lane.b32.xlu0 %v1400_v30, %s2988_s14 }
0x17cc   :  { %1019 = vrot.lane.b32.xlu0 %v2745_v31, %s2987_s0 }
0x17d0   :  { %441 = vrot.lane.b32.xlu0 %v439_v63, %s2988_s14 }
0x17d4   :  { %677 = vrot.lane.b32.xlu0 %v675_v9, %s2988_s14 }
0x17d8   :  { %913 = vrot.lane.b32.xlu0 %v911_v32, %s2988_s14 }
0x183a   :  { %v1403_v36 = vpop.permute.xlu0 %1402 }
0x183b   :  { %v3436_v37 = vadd.f32 %v1403_v36, %v1395_v20 }
0x183d   :  { %2746 = vtanh.f32 %v3436_v37  ;;  %v1419_v63 = vsel %vm320_vm8, %v3436_v37, %v3433_v34 }
0x183e   :  { %v1020_v12 = vpop.permute.xlu0 %1019 }
0x183f   :  { %v3451_v45 = vmul.f32 %v1020_v12, %v3376_v55 }
0x1841   :  { %v1029_v47 = vsel %vm1028_vm5, %v3451_v45, 0.0 }
0x1842   :  { %v442_v38 = vpop.permute.xlu0 %441 }
0x1843   :  { %445 = vst.msk [vmem:[#allocation2 + $0x10] sm:$0xff] %vm102_vm6, %v442_v38 }
0x1846   :  { %v678_v39 = vpop.permute.xlu0 %677 }
0x1847   :  { %681 = vst.msk [vmem:[#allocation2 + $0x20] sm:$0xff] %vm102_vm6, %v678_v39 }
0x184a   :  { %v2747_v19 = vpop.eup %2746  ;;  %v914_v40 = vpop.permute.xlu0 %913  ;;  %v1050_v41 = vld [vmem:[#allocation2 + $0x10] sm:$0xff] }
0x184b   :  { %917 = vst.msk [vmem:[#allocation2 + $0x30] sm:$0xff] %vm102_vm6, %v914_v40  ;;  %1408 = vrot.lane.b32.xlu1 %v2747_v19, %s2987_s0  ;;  %2554 = vmatprep.mubr.msk.f32.mxu0 %vm102_vm6, %v1050_v41 }
0x184e   :  { %v1052_v55 = vld [vmem:[#allocation2 + $0x20] sm:$0xff] }
0x184f   :  { %559 = vrot.lane.b32.xlu1 %v557_v28, %s2988_s14 }
0x1852   :  { %v1054_v57 = vld [vmem:[#allocation2 + $0x30] sm:$0xff] }
0x1853   :  { %795 = vrot.lane.b32.xlu1 %v793_v46, %s2988_s14 }
0x1857   :  { %1031 = vrot.lane.b32.xlu1 %v1029_v47, %s2988_s14 }
0x18bd   :  { %v1409_v44 = vpop.permute.xlu1 %1408 }
0x18be   :  { %v3462_v48 = vmul.f32 %v1409_v44, %v1394_v4 }
0x18c0   :  { %v3468_v49 = vsel %vm320_vm8, %v3462_v48, %v3382_v58 }
0x18c1   :  { %1423 = vrot.lane.b32.xlu0 %v3468_v49, %s2988_s14  ;;  %v560_v35 = vpop.permute.xlu1 %559 }
0x18c2   :  { %563 = vst.msk [vmem:[#allocation2 + $0x18] sm:$0xff] %vm102_vm6, %v560_v35 }
0x18c5   :  { %v796_v50 = vpop.permute.xlu1 %795 }
0x18c6   :  { %799 = vst.msk [vmem:[#allocation2 + $0x28] sm:$0xff] %vm102_vm6, %v796_v50 }
0x18c9   :  { %v1032_v52 = vpop.permute.xlu1 %1031  ;;  %v1051_v54 = vld [vmem:[#allocation2 + $0x18] sm:$0xff] }
0x18ca   :  { %1035 = vst.msk [vmem:[#allocation2 + $0x38] sm:$0xff] %vm102_vm6, %v1032_v52  ;;  %2555 = vmatmul.mubr.msk.f32.gmra.mxu0 %vm102_vm6, %v1051_v54 }
0x18cb   :  { %2557 = vmatprep.mubr.msk.f32.mxu0 %vm102_vm6, %v1052_v55 }
0x18cd   :  { %v1053_v56 = vld [vmem:[#allocation2 + $0x28] sm:$0xff] }
0x18ce   :  { %2558 = vmatmul.mubr.msk.f32.gmra.mxu0 %vm102_vm6, %v1053_v56 }
0x18cf   :  { %2560 = vmatprep.mubr.msk.f32.mxu0 %vm102_vm6, %v1054_v57 }
0x18d1   :  { %v1055_v58 = vld [vmem:[#allocation2 + $0x38] sm:$0xff] }
0x18d2   :  { %2561 = vmatmul.mubr.msk.f32.gmra.mxu0 %vm102_vm6, %v1055_v58 }
0x18d3   :  { %2593 = vmatprep.mubr.msk.f32.mxu0 %vm2985_vm0, %v2984_v1 }
0x1933   :  { %v1424_v59 = vpop.permute.xlu0 %1423 }
0x1934   :  { %2594 = vmatmul.mubr.msk.f32.vlgmr.msra.gmra.mxu0 %vm102_vm6, %v1424_v59 }
0x1935   :  { %2608 = vmatpush3.msra.mxu0 %v3314_v13  ;;  %2615 = vmatprep.mubr.msk.f32.mxu0 %vm2985_vm0, %v2984_v1 }
0x1936   :  { %2609 = vmatprep.subr.mxu0 %v2984_v1 }
0x1937   :  { %2610 = vmatpush3.msra.mxu0 %v3318_v14 }
0x1938   :  { %2611 = vmatprep.subr.mxu0 %v2984_v1 }
0x1939   :  { %2612 = vmatpush3.msra.mxu0 %v3321_v15 }
0x193a   :  { %2613 = vmatprep.subr.mxu0 %v2984_v1 }
0x193b   :  { %2614 = vmatpush3.msra.mxu0 %v3325_v16 }
0x193c   :  { %2629 = vmatprep.subr.mxu0 %v2984_v1 }
0x198a   :  { %v2556_v60 = vpop.f32.mrf.mxu0 }
0x198b   :  { %v1173_v34 = vadd.f32 %v2556_v60, %v3366_v5 }
0x198c   :  { %v1167_v62 = vpop.f32.mrf.mxu0 }
0x198d   :  { %v1168_v8 = vadd.f32 %v3366_v5, %v1167_v62 }
0x198e   :  { %v3493_v53 = vpop.f32.mrf.mxu0 }
0x1990   :  { %v3495_v6 = vpop.f32.mrf.mxu0 }
0x1992   :  { %v3497_v7 = vpop.f32.mrf.mxu0 }
0x1994   :  { %v3499_v0 = vpop.f32.mrf.mxu0 }
0x19f4   :  { %v1493_v11 = vpop.f32.mrf.mxu0 }
0x19f5   :  { %v1497_v2 = vadd.f32 %v1493_v11, %v1168_v8  ;;  %v1178_v11 = vadd.f32 %v3366_v5, %v3495_v6 }
0x19f6   :  { %v2595_v22 = vpop.f32.mrf.mxu0 }
0x19f7   :  { %v2342_v3 = vmul.f32 -1.442695, %v1497_v2 }
0x19f9   :  { %2748 = vpow2.f32 %v2342_v3 }
0x19fa   :  { %2750 = vtanh.f32 %v1497_v2 }
0x1a06   :  { %v2749_v24 = vpop.eup %2748 }
0x1a07   :  { %v1502_v4 = vadd.f32 1.0, %v2749_v24  ;;  %v2751_v25 = vpop.eup %2750 }
0x1a09   :  { %2752 = vrcp.f32 %v1502_v4 }
0x1a16   :  { %v2753_v26 = vpop.eup %2752 }
0x1a17   :  { %v1505_v29 = vsel %vm3125_vm4, %v2751_v25, %v2753_v26 }
0x1a18   :  { %1508 = vrot.lane.b32.xlu1 %v1505_v29, %s2987_s0  ;;  %v1506_v9 = vmul.f32 %v1505_v29, %v1419_v63 }
0x1a8a   :  { %v1509_v30 = vpop.permute.xlu1 %1508 }
0x1a8b   :  { %v1511_v31 = vmul.f32 %v1509_v30, %v1505_v29 }
0x1a8d   :  { %1513 = vrot.lane.b32.xlu0 %v1511_v31, %s2988_s14 }
0x1aff   :  { %v1514_v32 = vpop.permute.xlu0 %1513 }
0x1b00   :  { %v1516_v20 = vadd.f32 %v1514_v32, %v1506_v9 }
0x1b02   :  { %2754 = vtanh.f32 %v1516_v20  ;;  %v1530_v54 = vsel %vm438_vm10, %v1516_v20, %v1419_v63 }
0x1b0f   :  { %v2755_v36 = vpop.eup %2754 }
0x1b10   :  { %1519 = vrot.lane.b32.xlu1 %v2755_v36, %s2987_s0 }
0x1b82   :  { %v1520_v12 = vpop.permute.xlu1 %1519 }
0x1b83   :  { %v3511_v38 = vmul.f32 %v1520_v12, %v1505_v29 }
0x1b85   :  { %v1529_v39 = vsel %vm438_vm10, %v3511_v38, %v3468_v49 }
0x1b86   :  { %1534 = vrot.lane.b32.xlu0 %v1529_v39, %s2988_s14 }
0x1bf8   :  { %v1535_v19 = vpop.permute.xlu0 %1534 }
0x1bf9   :  { %2605 = vmatmul.mubr.msk.f32.vlgmr.msra.gmra.mxu1 %vm102_vm6, %v1535_v19 }
0x1bfa   :  { %2619 = vmatpush3.msra.mxu1 %v3314_v13  ;;  %2626 = vmatprep.mubr.msk.f32.mxu1 %vm2985_vm0, %v2984_v1 }
0x1bfb   :  { %2620 = vmatprep.subr.mxu1 %v2984_v1 }
0x1bfc   :  { %2621 = vmatpush3.msra.mxu1 %v3318_v14 }
0x1bfd   :  { %2622 = vmatprep.subr.mxu1 %v2984_v1 }
0x1bfe   :  { %2623 = vmatpush3.msra.mxu1 %v3321_v15 }
0x1bff   :  { %2624 = vmatprep.subr.mxu1 %v2984_v1 }
0x1c00   :  { %2625 = vmatpush3.msra.mxu1 %v3325_v16 }
0x1c01   :  { %2640 = vmatprep.subr.mxu1 %v2984_v1 }
0x1cb9   :  { %v1604_v37 = vpop.f32.mrf.mxu1 }
0x1cba   :  { %v1608_v40 = vadd.f32 %v1604_v37, %v1173_v34  ;;  %v1183_v37 = vadd.f32 %v3493_v53, %v3366_v5 }
0x1cbb   :  { %v2606_v41 = vpop.f32.mrf.mxu1 }
0x1cbc   :  { %v2344_v28 = vmul.f32 -1.442695, %v1608_v40 }
0x1cbe   :  { %2756 = vpow2.f32 %v2344_v28 }
0x1cbf   :  { %2758 = vtanh.f32 %v1608_v40 }
0x1ccb   :  { %v2757_v46 = vpop.eup %2756 }
0x1ccc   :  { %v1613_v47 = vadd.f32 1.0, %v2757_v46  ;;  %v2759_v44 = vpop.eup %2758 }
0x1cce   :  { %2760 = vrcp.f32 %v1613_v47 }
0x1cdb   :  { %v2761_v49 = vpop.eup %2760 }
0x1cdc   :  { %v1616_v35 = vsel %vm3125_vm4, %v2759_v44, %v2761_v49 }
0x1cdd   :  { %1619 = vrot.lane.b32.xlu1 %v1616_v35, %s2987_s0  ;;  %v1617_v55 = vmul.f32 %v1616_v35, %v1530_v54 }
0x1d4f   :  { %v1620_v50 = vpop.permute.xlu1 %1619 }
0x1d50   :  { %v1622_v52 = vmul.f32 %v1620_v50, %v1616_v35 }
0x1d52   :  { %1624 = vrot.lane.b32.xlu0 %v1622_v52, %s2988_s14 }
0x1dc4   :  { %v1625_v56 = vpop.permute.xlu0 %1624 }
0x1dc5   :  { %v1627_v57 = vadd.f32 %v1625_v56, %v1617_v55 }
0x1dc7   :  { %2762 = vtanh.f32 %v1627_v57  ;;  %v1641_v6 = vsel %vm556_vm12, %v1627_v57, %v1530_v54 }
0x1dd4   :  { %v2763_v58 = vpop.eup %2762 }
0x1dd5   :  { %1630 = vrot.lane.b32.xlu1 %v2763_v58, %s2987_s0  ;;  %v1188_v58 = vadd.f32 %v3366_v5, %v3499_v0 }
0x1e47   :  { %v1631_v59 = vpop.permute.xlu1 %1630 }
0x1e48   :  { %v3537_v60 = vmul.f32 %v1631_v59, %v1616_v35 }
0x1e4a   :  { %v1640_v62 = vsel %vm556_vm12, %v3537_v60, %v1529_v39 }
0x1e4b   :  { %1645 = vrot.lane.b32.xlu0 %v1640_v62, %s2988_s14 }
0x1ebd   :  { %v1646_v8 = vpop.permute.xlu0 %1645 }
0x1ebe   :  { %2616 = vmatmul.mubr.msk.f32.vlgmr.msra.gmra.mxu0 %vm102_vm6, %v1646_v8 }
0x1ebf   :  { %2630 = vmatpush3.msra.mxu0 %v3314_v13  ;;  %2637 = vmatprep.mubr.msk.f32.mxu0 %vm2985_vm0, %v2984_v1 }
0x1ec0   :  { %2631 = vmatprep.subr.mxu0 %v2984_v1 }
0x1ec1   :  { %2632 = vmatpush3.msra.mxu0 %v3318_v14 }
0x1ec2   :  { %2633 = vmatprep.subr.mxu0 %v2984_v1 }
0x1ec3   :  { %2634 = vmatpush3.msra.mxu0 %v3321_v15 }
0x1ec4   :  { %2635 = vmatprep.subr.mxu0 %v2984_v1 }
0x1ec5   :  { %2636 = vmatpush3.msra.mxu0 %v3325_v16 }
0x1f7e   :  { %v1715_v2 = vpop.f32.mrf.mxu0 }
0x1f7f   :  { %v1719_v22 = vadd.f32 %v1715_v2, %v1178_v11 }
0x1f80   :  { %v2617_v3 = vpop.f32.mrf.mxu0 }
0x1f81   :  { %v2346_v24 = vmul.f32 -1.442695, %v1719_v22 }
0x1f83   :  { %2764 = vpow2.f32 %v2346_v24 }
0x1f84   :  { %2766 = vtanh.f32 %v1719_v22 }
0x1f90   :  { %v2765_v4 = vpop.eup %2764 }
0x1f91   :  { %v1724_v25 = vadd.f32 1.0, %v2765_v4  ;;  %v2767_v26 = vpop.eup %2766 }
0x1f93   :  { %2768 = vrcp.f32 %v1724_v25 }
0x1fa0   :  { %v2769_v29 = vpop.eup %2768 }
0x1fa1   :  { %v1727_v30 = vsel %vm3125_vm4, %v2767_v26, %v2769_v29 }
0x1fa2   :  { %1730 = vrot.lane.b32.xlu1 %v1727_v30, %s2987_s0  ;;  %v1728_v9 = vmul.f32 %v1727_v30, %v1641_v6 }
0x2014   :  { %v1731_v31 = vpop.permute.xlu1 %1730 }
0x2015   :  { %v1733_v63 = vmul.f32 %v1731_v31, %v1727_v30 }
0x2017   :  { %1735 = vrot.lane.b32.xlu0 %v1733_v63, %s2988_s14 }
0x2089   :  { %v1736_v32 = vpop.permute.xlu0 %1735 }
0x208a   :  { %v1738_v20 = vadd.f32 %v1736_v32, %v1728_v9 }
0x208c   :  { %2770 = vtanh.f32 %v1738_v20  ;;  %v1752_v53 = vsel %vm674_vm14, %v1738_v20, %v1641_v6 }
0x2099   :  { %v2771_v36 = vpop.eup %2770 }
0x209a   :  { %1741 = vrot.lane.b32.xlu1 %v2771_v36, %s2987_s0  ;;  %v1193_v36 = vadd.f32 %v3497_v7, %v3366_v5  ;;  %v1412_v5 = vsel %vm320_vm8, %v3462_v48, 0.0  ;;  %v1634_v7 = vsel %vm556_vm12, %v3537_v60, 0.0 }
0x210c   :  { %v1742_v12 = vpop.permute.xlu1 %1741 }
0x210d   :  { %v3562_v39 = vmul.f32 %v1742_v12, %v1727_v30 }
0x210f   :  { %v1751_v19 = vsel %vm674_vm14, %v3562_v39, %v1640_v62 }
0x2110   :  { %1756 = vrot.lane.b32.xlu0 %v1751_v19, %s2988_s14 }
0x2182   :  { %v1757_v34 = vpop.permute.xlu0 %1756 }
0x2183   :  { %2627 = vmatmul.mubr.msk.f32.vlgmr.msra.gmra.mxu1 %vm102_vm6, %v1757_v34 }
0x2184   :  { %2641 = vmatpush3.msra.mxu1 %v3314_v13  ;;  %2648 = vmatprep.mubr.msk.f32.mxu1 %vm2985_vm0, %v2984_v1 }
0x2185   :  { %2642 = vmatprep.subr.mxu1 %v2984_v1 }
0x2186   :  { %2643 = vmatpush3.msra.mxu1 %v3318_v14 }
0x2187   :  { %2644 = vmatprep.subr.mxu1 %v2984_v1 }
0x2188   :  { %2645 = vmatpush3.msra.mxu1 %v3321_v15 }
0x2189   :  { %2646 = vmatprep.subr.mxu1 %v2984_v1 }
0x218a   :  { %2647 = vmatpush3.msra.mxu1 %v3325_v16 }
0x2243   :  { %v1826_v40 = vpop.f32.mrf.mxu1 }
0x2244   :  { %v1830_v13 = vadd.f32 %v1826_v40, %v1183_v37 }
0x2245   :  { %v2628_v41 = vpop.f32.mrf.mxu1 }
0x2246   :  { %v2348_v28 = vmul.f32 -1.442695, %v1830_v13 }
0x2248   :  { %2772 = vpow2.f32 %v2348_v28 }
0x2249   :  { %2774 = vtanh.f32 %v1830_v13 }
0x2255   :  { %v2773_v46 = vpop.eup %2772 }
0x2256   :  { %v1835_v47 = vadd.f32 1.0, %v2773_v46  ;;  %v2775_v14 = vpop.eup %2774 }
0x2258   :  { %2776 = vrcp.f32 %v1835_v47 }
0x2265   :  { %v2777_v44 = vpop.eup %2776 }
0x2266   :  { %v1838_v15 = vsel %vm3125_vm4, %v2775_v14, %v2777_v44 }
0x2267   :  { %1841 = vrot.lane.b32.xlu1 %v1838_v15, %s2987_s0  ;;  %v1839_v49 = vmul.f32 %v1838_v15, %v1752_v53 }
0x22d9   :  { %v1842_v1 = vpop.permute.xlu1 %1841 }
0x22da   :  { %v1844_v16 = vmul.f32 %v1842_v1, %v1838_v15 }
0x22dc   :  { %1846 = vrot.lane.b32.xlu0 %v1844_v16, %s2988_s14  ;;  %v1523_v16 = vsel %vm438_vm10, %v3511_v38, 0.0 }
0x234e   :  { %v1847_v35 = vpop.permute.xlu0 %1846 }
0x234f   :  { %v1849_v50 = vadd.f32 %v1847_v35, %v1839_v49  ;;  %v3647_v35 = vld [vmem:[#allocation2] sm:$0xff] }
0x2350   :  { %v2113_v38 = vmul.f32 %v3652_v17, %v3647_v35 }
0x2351   :  { %2778 = vtanh.f32 %v1849_v50  ;;  %v1863_v0 = vsel %vm792_vm1, %v1849_v50, %v1752_v53  ;;  %v1745_v53 = vsel %vm674_vm14, %v3562_v39, 0.0 }
0x2352   :  { %v2121_v10 = vsel %vm102_vm6, %v2113_v38, 0.0 }
0x235e   :  { %v2779_v52 = vpop.eup %2778 }
0x235f   :  { %1852 = vrot.lane.b32.xlu1 %v2779_v52, %s2987_s0 }
0x23d1   :  { %v1853_v54 = vpop.permute.xlu1 %1852 }
0x23d2   :  { %v1855_v55 = vmul.f32 %v1853_v54, %v1838_v15 }
0x23d4   :  { %v1862_v56 = vsel %vm792_vm1, %v1855_v55, %v1751_v19  ;;  %v1856_v18 = vsel %vm792_vm1, %v1855_v55, 0.0 }
0x23d5   :  { %1867 = vrot.lane.b32.xlu0 %v1862_v56, %s2988_s14 }
0x2447   :  { %v1868_v57 = vpop.permute.xlu0 %1867 }
0x2448   :  { %2638 = vmatmul.mubr.msk.f32.vlgmr.msra.gmra.mxu0 %vm102_vm6, %v1868_v57 }
0x2508   :  { %v1937_v59 = vpop.f32.mrf.mxu0 }
0x2509   :  { %v1941_v62 = vadd.f32 %v1937_v59, %v1188_v58 }
0x250a   :  { %v2639_v8 = vpop.f32.mrf.mxu0 }
0x250b   :  { %v2350_v11 = vmul.f32 -1.442695, %v1941_v62 }
0x250d   :  { %2780 = vpow2.f32 %v2350_v11 }
0x250e   :  { %2782 = vtanh.f32 %v1941_v62 }
0x251a   :  { %v2781_v2 = vpop.eup %2780 }
0x251b   :  { %v1946_v22 = vadd.f32 1.0, %v2781_v2  ;;  %v2783_v3 = vpop.eup %2782 }
0x251d   :  { %2784 = vrcp.f32 %v1946_v22 }
0x252a   :  { %v2785_v24 = vpop.eup %2784 }
0x252b   :  { %v1949_v4 = vsel %vm3125_vm4, %v2783_v3, %v2785_v24 }
0x252c   :  { %1952 = vrot.lane.b32.xlu1 %v1949_v4, %s2987_s0  ;;  %v1950_v29 = vmul.f32 %v1949_v4, %v1863_v0 }
0x259e   :  { %v1953_v25 = vpop.permute.xlu1 %1952 }
0x259f   :  { %v1955_v26 = vmul.f32 %v1953_v25, %v1949_v4 }
0x25a1   :  { %1957 = vrot.lane.b32.xlu0 %v1955_v26, %s2988_s14 }
0x2613   :  { %v1958_v30 = vpop.permute.xlu0 %1957 }
0x2614   :  { %v1960_v31 = vadd.f32 %v1958_v30, %v1950_v29 }
0x2616   :  { %2786 = vtanh.f32 %v1960_v31  ;;  %v3626_v44 = vsel %vm910_vm3, %v1960_v31, %v1863_v0 }
0x2623   :  { %v2787_v63 = vpop.eup %2786 }
0x2624   :  { %1963 = vrot.lane.b32.xlu1 %v2787_v63, %s2987_s0  ;;  %v3693_v63 = vld [vmem:[#allocation4] ss:$0 sm:$0xff] }
0x2696   :  { %v1964_v6 = vpop.permute.xlu1 %1963 }
0x2697   :  { %v1966_v9 = vmul.f32 %v1964_v6, %v1949_v4 }
0x2699   :  { %v3602_v32 = vsel %vm910_vm3, %v1966_v9, %v1862_v56  ;;  %v1967_v49 = vsel %vm910_vm3, %v1966_v9, 0.0 }
0x269a   :  { %1978 = vrot.lane.b32.xlu0 %v3602_v32, %s2988_s14 }
0x270c   :  { %v1979_v20 = vpop.permute.xlu0 %1978 }
0x270d   :  { %2649 = vmatmul.mubr.msk.f32.vlgmr.msra.gmra.mxu1 %vm102_vm6, %v1979_v20 }
0x27cd   :  { %v2048_v12 = vpop.f32.mrf.mxu1 }
0x27ce   :  { %v2052_v19 = vadd.f32 %v2048_v12, %v1193_v36 }
0x27cf   :  { %v2650_v34 = vpop.f32.mrf.mxu1 }
0x27d0   :  { %v2352_v37 = vmul.f32 -1.442695, %v2052_v19 }
0x27d2   :  { %2788 = vpow2.f32 %v2352_v37 }
0x27d3   :  { %2790 = vtanh.f32 %v2052_v19 }
0x27df   :  { %v2789_v40 = vpop.eup %2788 }
0x27e0   :  { %v2057_v13 = vadd.f32 1.0, %v2789_v40  ;;  %v2791_v41 = vpop.eup %2790 }
0x27e2   :  { %2792 = vrcp.f32 %v2057_v13 }
0x27ef   :  { %v2793_v28 = vpop.eup %2792 }
0x27f0   :  { %v2060_v46 = vsel %vm3125_vm4, %v2791_v41, %v2793_v28 }
0x27f1   :  { %2063 = vrot.lane.b32.xlu1 %v2060_v46, %s2987_s0  ;;  %v2061_v51 = vmul.f32 %v2060_v46, %v3626_v44 }
0x2863   :  { %v2064_v47 = vpop.permute.xlu1 %2063 }
0x2864   :  { %v2066_v14 = vmul.f32 %v2064_v47, %v2060_v46 }
0x2866   :  { %2068 = vrot.lane.b32.xlu0 %v2066_v14, %s2988_s14 }
0x286a   :  { %1414 = vrot.lane.b32.xlu0 %v1412_v5, %s2988_s14 }
0x286e   :  { %1636 = vrot.lane.b32.xlu0 %v1634_v7, %s2988_s14 }
0x2872   :  { %1858 = vrot.lane.b32.xlu0 %v1856_v18, %s2988_s14 }
0x28d8   :  { %v2069_v48 = vpop.permute.xlu0 %2068 }
0x28d9   :  { %v3629_v15 = vadd.f32 %v2069_v48, %v2061_v51 }
0x28db   :  { %2794 = vtanh.f32 %v3629_v15 }
0x28dc   :  { %v1415_v42 = vpop.permute.xlu0 %1414 }
0x28dd   :  { %1417 = vst.msk [vmem:[#allocation2 + $0x8] sm:$0xff] %vm102_vm6, %v1415_v42 }
0x28e0   :  { %v1637_v60 = vpop.permute.xlu0 %1636 }
0x28e1   :  { %1639 = vst.msk [vmem:[#allocation2 + $0x18] sm:$0xff] %vm102_vm6, %v1637_v60 }
0x28e4   :  { %v1859_v33 = vpop.permute.xlu0 %1858  ;;  %v3673_v11 = vld [vmem:[#allocation2 + $0x8] sm:$0xff] }
0x28e5   :  { %1861 = vst.msk [vmem:[#allocation2 + $0x28] sm:$0xff] %vm102_vm6, %v1859_v33  ;;  %v2114_v2 = vmul.f32 %v3652_v17, %v3673_v11 }
0x28e7   :  { %v2124_v3 = vsel %vm102_vm6, %v2114_v2, 0.0 }
0x28e8   :  { %v2795_v1 = vpop.eup %2794  ;;  %v3656_v50 = vld [vmem:[#allocation2 + $0x18] sm:$0xff] }
0x28e9   :  { %2074 = vrot.lane.b32.xlu1 %v2795_v1, %s2987_s0  ;;  %v2116_v61 = vmul.f32 %v3652_v17, %v3656_v50 }
0x28eb   :  { %v2130_v52 = vsel %vm102_vm6, %v2116_v61, 0.0 }
0x28ec   :  { %v3661_v39 = vld [vmem:[#allocation2 + $0x28] sm:$0xff] }
0x28ed   :  { %1525 = vrot.lane.b32.xlu1 %v1523_v16, %s2988_s14  ;;  %v2118_v54 = vmul.f32 %v3652_v17, %v3661_v39 }
0x28ef   :  { %v2136_v55 = vsel %vm102_vm6, %v2118_v54, 0.0 }
0x28f1   :  { %1747 = vrot.lane.b32.xlu1 %v1745_v53, %s2988_s14 }
0x28f5   :  { %1969 = vrot.lane.b32.xlu1 %v1967_v49, %s2988_s14 }
0x2919   :  { %2122 = vadd.xlane.f32.xlu1 %v2121_v10 }
0x291d   :  { %2131 = vadd.xlane.f32.xlu1 %v2130_v52 }
0x2921   :  { %2137 = vadd.xlane.f32.xlu1 %v2136_v55 }
0x295b   :  { %v2075_v56 = vpop.permute.xlu1 %2074 }
0x295c   :  { %v2077_v57 = vmul.f32 %v2075_v56, %v2060_v46 }
0x295e   :  { %v2078_v58 = vsel %vm1028_vm5, %v2077_v57, 0.0  ;;  %v2084_v51 = vsel %vm1028_vm5, %v2077_v57, %v3602_v32 }
0x295f   :  { %2080 = vrot.lane.b32.xlu0 %v2078_v58, %s2988_s14  ;;  %v1526_v59 = vpop.permute.xlu1 %1525 }
0x2960   :  { %1528 = vst.msk [vmem:[#allocation2 + $0x10] sm:$0xff] %vm102_vm6, %v1526_v59 }
0x2963   :  { %v1748_v62 = vpop.permute.xlu1 %1747 }
0x2964   :  { %1750 = vst.msk [vmem:[#allocation2 + $0x20] sm:$0xff] %vm102_vm6, %v1748_v62 }
0x2967   :  { %v1970_v8 = vpop.permute.xlu1 %1969  ;;  %v3677_v22 = vld [vmem:[#allocation2 + $0x10] sm:$0xff] }
0x2968   :  { %1972 = vst.msk [vmem:[#allocation2 + $0x30] sm:$0xff] %vm102_vm6, %v1970_v8  ;;  %v2115_v24 = vmul.f32 %v3652_v17, %v3677_v22 }
0x296a   :  { %v2127_v25 = vsel %vm102_vm6, %v2115_v24, 0.0 }
0x296b   :  { %v3682_v4 = vld [vmem:[#allocation2 + $0x20] sm:$0xff] }
0x296c   :  { %v2117_v26 = vmul.f32 %v3652_v17, %v3682_v4 }
0x296e   :  { %v2133_v29 = vsel %vm102_vm6, %v2117_v26, 0.0 }
0x296f   :  { %v3687_v0 = vld [vmem:[#allocation2 + $0x30] sm:$0xff] }
0x2970   :  { %v2119_v30 = vmul.f32 %v3652_v17, %v3687_v0 }
0x2972   :  { %v2139_v31 = vsel %vm102_vm6, %v2119_v30, 0.0  ;;  %v1036_v30 = vsel %vm1028_vm5, %v3451_v45, %v3337_v21 }
0x297e   :  { %2125 = vadd.xlane.f32.xlu0 %v2124_v3 }
0x2982   :  { %2128 = vadd.xlane.f32.xlu0 %v2127_v25 }
0x2986   :  { %2134 = vadd.xlane.f32.xlu0 %v2133_v29 }
0x298a   :  { %2140 = vadd.xlane.f32.xlu0 %v2139_v31  ;;  %v1037_v31 = vsel %vm1028_vm5, %v3414_v27, %v3410_v23 }
0x29a2   :  { %v2123_v6 = vpop.xlane.xlu1 %2122 }
0x29a3   :  { %v2152_v9 = vadd.f32 %v3693_v63, %v2123_v6 }
0x29a5   :  { %v2355_v20 = vmul.f32 -1.442695, %v2152_v9 }
0x29a6   :  { %v2132_v36 = vpop.xlane.xlu1 %2131 }
0x29a7   :  { %2796 = vpow2.f32 %v2355_v20  ;;  %v2155_v12 = vadd.f32 %v3693_v63, %v2132_v36 }
0x29a9   :  { %v2358_v19 = vmul.f32 -1.442695, %v2155_v12 }
0x29aa   :  { %v2138_v34 = vpop.xlane.xlu1 %2137 }
0x29ab   :  { %2798 = vpow2.f32 %v2358_v19  ;;  %v2157_v37 = vadd.f32 %v3693_v63, %v2138_v34 }
0x29ad   :  { %v2360_v40 = vmul.f32 -1.442695, %v2157_v37 }
0x29af   :  { %2800 = vpow2.f32 %v2360_v40 }
0x29b4   :  { %v2797_v13 = vpop.eup %2796 }
0x29b5   :  { %v2184_v41 = vadd.f32 1.0, %v2797_v13 }
0x29b7   :  { %2802 = vrcp.f32 %v2184_v41 }
0x29b8   :  { %v2799_v28 = vpop.eup %2798 }
0x29b9   :  { %v2187_v46 = vadd.f32 1.0, %v2799_v28 }
0x29bb   :  { %2804 = vrcp.f32 %v2187_v46 }
0x29bc   :  { %v2801_v47 = vpop.eup %2800 }
0x29bd   :  { %v2189_v14 = vadd.f32 1.0, %v2801_v47 }
0x29bf   :  { %2806 = vrcp.f32 %v2189_v14 }
0x29c4   :  { %v2803_v5 = vpop.eup %2802 }
0x29c5   :  { %2210 = vperm.xlu0 %2667, %v2803_v5  }
0x29c8   :  { %v2805_v7 = vpop.eup %2804 }
0x29c9   :  { %2225 = vperm.xlu0 %2667, %v2805_v7  }
0x29cc   :  { %v2807_v18 = vpop.eup %2806 }
0x29cd   :  { %2235 = vperm.xlu0 %2667, %v2807_v18  }
0x29d1   :  { %v2081_v48 = vpop.permute.xlu0 %2080  ;;  %2087 = vrot.lane.b32.xlu0 %v2084_v51, %s2988_s14 }
0x29d2   :  { %2083 = vst.msk [vmem:[#allocation2 + $0x38] sm:$0xff] %vm102_vm6, %v2081_v48 }
0x29d9   :  { %v3703_v42 = vld [vmem:[#allocation2 + $0x38] sm:$0xff] }
0x29da   :  { %v2120_v60 = vmul.f32 %v3652_v17, %v3703_v42 }
0x29dc   :  { %v2142_v33 = vsel %vm102_vm6, %v2120_v60, 0.0 }
0x29dd   :  { %2143 = vadd.xlane.f32.xlu1 %v2142_v33 }
0x2a07   :  { %v2126_v1 = vpop.xlane.xlu0 %2125 }
0x2a08   :  { %v2153_v16 = vadd.f32 %v3693_v63, %v2126_v1 }
0x2a0a   :  { %v2356_v53 = vmul.f32 -1.442695, %v2153_v16 }
0x2a0b   :  { %v2129_v49 = vpop.xlane.xlu0 %2128 }
0x2a0c   :  { %2808 = vpow2.f32 %v2356_v53  ;;  %v2154_v32 = vadd.f32 %v3693_v63, %v2129_v49 }
0x2a0e   :  { %v2357_v38 = vmul.f32 -1.442695, %v2154_v32 }
0x2a0f   :  { %v2135_v10 = vpop.xlane.xlu0 %2134 }
0x2a10   :  { %2810 = vpow2.f32 %v2357_v38  ;;  %v2156_v61 = vadd.f32 %v3693_v63, %v2135_v10 }
0x2a12   :  { %v2359_v52 = vmul.f32 -1.442695, %v2156_v61 }
0x2a13   :  { %v2141_v54 = vpop.xlane.xlu0 %2140 }
0x2a14   :  { %2812 = vpow2.f32 %v2359_v52  ;;  %v2158_v17 = vadd.f32 %v3693_v63, %v2141_v54 }
0x2a16   :  { %v2361_v55 = vmul.f32 -1.442695, %v2158_v17 }
0x2a18   :  { %2814 = vpow2.f32 %v2361_v55 }
0x2a19   :  { %v2809_v56 = vpop.eup %2808 }
0x2a1a   :  { %v2185_v57 = vadd.f32 1.0, %v2809_v56 }
0x2a1c   :  { %2816 = vrcp.f32 %v2185_v57 }
0x2a1d   :  { %v2811_v58 = vpop.eup %2810 }
0x2a1e   :  { %v2186_v59 = vadd.f32 1.0, %v2811_v58 }
0x2a20   :  { %2818 = vrcp.f32 %v2186_v59 }
0x2a21   :  { %v2813_v62 = vpop.eup %2812 }
0x2a22   :  { %v2188_v8 = vadd.f32 1.0, %v2813_v62 }
0x2a24   :  { %2820 = vrcp.f32 %v2188_v8 }
0x2a25   :  { %v2815_v2 = vpop.eup %2814 }
0x2a26   :  { %v2190_v3 = vadd.f32 1.0, %v2815_v2 }
0x2a28   :  { %2822 = vrcp.f32 %v2190_v3 }
0x2a29   :  { %v2817_v24 = vpop.eup %2816 }
0x2a2a   :  { %2215 = vperm.xlu1 %2666, %v2817_v24  }
0x2a2d   :  { %v2819_v25 = vpop.eup %2818 }
0x2a2e   :  { %2220 = vperm.xlu1 %2666, %v2819_v25  }
0x2a31   :  { %v2821_v26 = vpop.eup %2820 }
0x2a32   :  { %2230 = vperm.xlu1 %2666, %v2821_v26  }
0x2a35   :  { %v2823_v29 = vpop.eup %2822 }
0x2a36   :  { %2240 = vperm.xlu1 %2666, %v2823_v29  }
0x2a3a   :  { %1039 = vrot.lane.b32.xlu1 %v1036_v30, %s2988_s14 }
0x2a3e   :  { %1044 = vrot.lane.b32.xlu1 %v1037_v31, %s2989_s6 }
0x2a40   :  { %v2211_v6 = vpop.permute.xlu0 %2210 }
0x2a41   :  { %v2248_v9 = vmul.f32 %v2211_v6, %v3647_v35 }
0x2a43   :  { %2256 = vst.msk [vmem:[#allocation13] sm:$0xff] %vm102_vm6, %v2248_v9 }
0x2a44   :  { %v2226_v20 = vpop.permute.xlu0 %2225 }
0x2a45   :  { %v2251_v36 = vmul.f32 %v2226_v20, %v3656_v50  ;;  %v2085_v50 = vsel %vm1028_vm5, %v3629_v15, %v3626_v44 }
0x2a47   :  { %2259 = vst.msk [vmem:[#allocation13 + $0x18] sm:$0xff] %vm102_vm6, %v2251_v36 }
0x2a48   :  { %v2236_v21 = vpop.permute.xlu0 %2235 }
0x2a49   :  { %v2253_v45 = vmul.f32 %v2236_v21, %v3661_v39 }
0x2a4b   :  { %2261 = vst.msk [vmem:[#allocation13 + $0x28] sm:$0xff] %vm102_vm6, %v2253_v45 }
0x2a4c   :  { %v2088_v12 = vpop.permute.xlu0 %2087 }
0x2a4d   :  { %2091 = vst.msk [vmem:[#allocation14 + $0x8] sm:$0xff] %vm102_vm6, %v2088_v12 }
0x2a66   :  { %v2144_v23 = vpop.xlane.xlu1 %2143 }
0x2a67   :  { %v2159_v27 = vadd.f32 %v3693_v63, %v2144_v23 }
0x2a69   :  { %v2362_v19 = vmul.f32 -1.442695, %v2159_v27 }
0x2a6b   :  { %2824 = vpow2.f32 %v2362_v19 }
0x2a78   :  { %v2825_v35 = vpop.eup %2824 }
0x2a79   :  { %v2191_v34 = vadd.f32 1.0, %v2825_v35 }
0x2a7b   :  { %2826 = vrcp.f32 %v2191_v34 }
0x2a88   :  { %v2827_v37 = vpop.eup %2826 }
0x2a89   :  { %2245 = vperm.xlu0 %2667, %v2827_v37  }
0x2a8d   :  { %2093 = vrot.lane.b32.xlu0 %v2085_v50, %s2989_s6 }
0x2aa5   :  { %v2216_v39 = vpop.permute.xlu1 %2215 }
0x2aa6   :  { %v2249_v40 = vmul.f32 %v2216_v39, %v3673_v11 }
0x2aa8   :  { %2257 = vst.msk [vmem:[#allocation13 + $0x8] sm:$0xff] %vm102_vm6, %v2249_v40 }
0x2aa9   :  { %v2221_v13 = vpop.permute.xlu1 %2220 }
0x2aaa   :  { %v2250_v63 = vmul.f32 %v2221_v13, %v3677_v22 }
0x2aac   :  { %2258 = vst.msk [vmem:[#allocation13 + $0x10] sm:$0xff] %vm102_vm6, %v2250_v63 }
0x2aad   :  { %v2231_v41 = vpop.permute.xlu1 %2230 }
0x2aae   :  { %v2252_v28 = vmul.f32 %v2231_v41, %v3682_v4 }
0x2ab0   :  { %2260 = vst.msk [vmem:[#allocation13 + $0x20] sm:$0xff] %vm102_vm6, %v2252_v28 }
0x2ab1   :  { %v2241_v46 = vpop.permute.xlu1 %2240 }
0x2ab2   :  { %v2254_v43 = vmul.f32 %v2241_v46, %v3687_v0 }
0x2ab4   :  { %2262 = vst.msk [vmem:[#allocation13 + $0x30] sm:$0xff] %vm102_vm6, %v2254_v43 }
0x2ab5   :  { %v1040_v44 = vpop.permute.xlu1 %1039 }
0x2ab6   :  { %1042 = vst.msk [vmem:[#allocation14] sm:$0xff] %vm102_vm6, %v1040_v44 }
0x2ab7   :  { %2919 = shalt.err (!%p2916_p10)
}
0x2ab8   :  { %2287 = dma.vmem_to_hbm [thread:$0]  %s2282_s19, 256, %s3773_s9, [#allocation15], %s2980_s7, %s2980_s7, %s2981_s20  }
0x2ab9   :  { %v1045_v15 = vpop.permute.xlu1 %1044  ;;  %s2991_s24 = smov [#allocation13]   ;;  %s2992_s26 = smov [#allocation16]  }
0x2aba   :  { %1047 = vst.msk [vmem:[#allocation16] sm:$0xff] %vm102_vm6, %v1045_v15  ;;  %s2269_s25 = sshll.u32 %s2991_s24, 4  ;;  %s2293_s27 = sshll.u32 %s2992_s26, 4  ;;  %s2270_s25 = int_to_ptr.vmem [resolvable:$true] %s2269_s25  ;;  %s2294_s27 = int_to_ptr.vmem [resolvable:$true] %s2293_s27 }
0x2abb   :  { %s2928_s28 = scalar_lea.vmem %s2270_s25, 1024  ;;  %p2933_p12 = scmp.lt.s32.totalorder %s2270_s25, %s2270_s25 }
0x2abc   :  { %p2929_p11 = scmp.ne.s32.totalorder %s2270_s25, %s2928_s28  ;;  %p2934_p13 = scmp.lt.s32.totalorder %s2928_s28, %s2928_s28 }
0x2abe   :  { %p2935_p0 = por %p2934_p13, %p2933_p12 }
0x2ac0   :  { %p2936_p1 = pnand %p2935_p0, %p2929_p11 }
0x2b04   :  { %v2246_v11 = vpop.permute.xlu0 %2245 }
0x2b05   :  { %v2255_v22 = vmul.f32 %v2246_v11, %v3703_v42 }
0x2b07   :  { %2263 = vst.msk [vmem:[#allocation13 + $0x38] sm:$0xff] %vm102_vm6, %v2255_v22 }
0x2b08   :  { %v2094_v4 = vpop.permute.xlu0 %2093 }
0x2b09   :  { %2939 = shalt.err (!%p2936_p1)
}
0x2b0a   :  { %2275 = dma.vmem_to_hbm [thread:$0]  %s2270_s25, 1024, %s3772_s8, [#allocation7], %s2980_s7, %s2980_s7, %s2981_s20   ;;  %2097 = vst.msk [vmem:[#allocation16 + $0x8] sm:$0xff] %vm102_vm6, %v2094_v4 }
0x2b0b   :  { %s2948_s2 = scalar_lea.vmem %s2294_s27, 256  ;;  %p2953_p3 = scmp.lt.s32.totalorder %s2294_s27, %s2294_s27 }
0x2b0c   :  { %p2949_p2 = scmp.ne.s32.totalorder %s2294_s27, %s2948_s2  ;;  %p2954_p4 = scmp.lt.s32.totalorder %s2948_s2, %s2948_s2 }
0x2b0e   :  { %p2955_p5 = por %p2954_p4, %p2953_p3 }
0x2b10   :  { %p2956_p6 = pnand %p2955_p5, %p2949_p2 }
0x2b12   :  { %2959 = shalt.err (!%p2956_p6)
}
0x2b13   :  { %2299 = dma.vmem_to_hbm [thread:$0]  %s2294_s27, 256, %s3774_s10, [#allocation15], %s2980_s7, %s2980_s7, %s2981_s20  }
0x2b14   :  { %2974 = dma.done.wait [#allocation7], 1024  }
0x2b15   :  { %2975 = vsyncadd [#allocation7], 4294966272 }
0x2b16   :  { %2976 = dma.done.wait [#allocation15], 512  }
0x2b17   :  { %2977 = vsyncadd [#allocation15], 4294966784 }
0x2b18   :  { %2309 = vsyncpa [#allocation6], 1 }
0x2b19   :  { %2310 = vsyncpa [#allocation9], 1 }
0x2b1a   :  { %2311 = vsyncpa [#allocation12], 1 }
0x2b1b   :  { %2312 = vsyncpa [#allocation7], 1 }
0x2b1c   :  { %2313 = vsyncpa [#allocation15], 1 }

</bundles_post_ra>
